<compile_context>
chip_gen: v7x
topology: tpu7x:2x2x1
jax: 0.10.0
libtpu: 0.0.40
codegen_flags: <defaults>
</compile_context>

<pallas_src>
import functools

import jax
import jax.numpy as jnp
from jax.experimental import pallas as pl
from jax.experimental.pallas import tpu as pltpu


def _spatial_attention_kernel(w_ref, b_ref, x_ref, o_ref, *, k, W, PADLEN):
    """One grid step processes a block of B batch elements.

    w_ref : SMEM (2*k*k,) f32  flattened conv weight, index = c*k*k + kh*k + kw
    b_ref : SMEM (1,)     f32  conv bias
    x_ref : VMEM (B, C, H*W)   input block (lane-dense: last dim = H*W)
    o_ref : VMEM (B, 1, H*W)   output attention-map block
    """
    p = (k - 1) // 2
    B, C, HW = x_ref.shape

    # ---- fused channel max + sum: single streamed pass over C ---------------
    CCHUNK = 8
    run_max = None
    run_sum = None
    c0 = 0
    while c0 < C:
        cc = min(CCHUNK, C - c0)
        xc = x_ref[:, c0:c0 + cc, :].astype(jnp.float32)      # (B, cc, HW)
        pm = jnp.max(xc, axis=1)
        ps = jnp.sum(xc, axis=1)
        run_max = pm if run_max is None else jnp.maximum(run_max, pm)
        run_sum = ps if run_sum is None else run_sum + ps
        c0 += cc
    max_map = run_max                                          # (B, HW) f32
    avg_map = run_sum * (1.0 / C)                              # (B, HW) f32

    # ---- zero-extend pooled maps to PADLEN lanes (vreg-aligned concat) ------
    if PADLEN > HW:
        tail = jnp.zeros((B, PADLEN - HW), jnp.float32)
        padded = (jnp.concatenate([max_map, tail], axis=-1),
                  jnp.concatenate([avg_map, tail], axis=-1))   # (B, PADLEN)
    else:
        padded = (max_map, avg_map)

    # Flat column index (f mod W), used for the conv edge masks.
    lane = jax.lax.broadcasted_iota(jnp.int32, (B, PADLEN), 1)
    if W & (W - 1) == 0:
        col = lane & (W - 1)
    else:
        lf = lane.astype(jnp.float32)
        col = (lf - jnp.floor(lf / W) * W).astype(jnp.int32)

    # ---- 2-in / 1-out k x k "same" conv on the flattened maps ---------------
    # out[f] = bias + sum_{c,kh,kw} w[c,kh,kw] * padded_c[f + (kh-p)*W + (kw-p)]
    # with contributions masked out where the column j + kw - p leaves [0, W).
    # Shifts are circular pltpu.roll's (XLU); PADLEN >= HW + p*(W+1) and
    # PADLEN % W == 0 guarantee every wrapped read lands on zeros or is masked.
    T = [None] * k                       # per-kh partial sums, before row shift
    for c in range(2):
        for kw in range(k):
            dwc = kw - p
            base = padded[c]
            if dwc != 0:
                base = pltpu.roll(base, (-dwc) % PADLEN, axis=1)
                if dwc > 0:
                    base = jnp.where(col < (W - dwc), base, 0.0)
                else:
                    base = jnp.where(col >= (-dwc), base, 0.0)
            for kh in range(k):
                wv = w_ref[c * k * k + kh * k + kw]
                term = base * wv
                T[kh] = term if T[kh] is None else T[kh] + term

    acc = None
    for kh in range(k):
        dh = kh - p
        t = T[kh]
        if dh != 0:
            t = pltpu.roll(t, (-(dh * W)) % PADLEN, axis=1)
        acc = t if acc is None else acc + t

    out = jax.nn.sigmoid(acc[:, :HW] + b_ref[0])
    o_ref[:, 0, :] = out.astype(o_ref.dtype)


def spatial_attention(x, weight, bias, kernel_size):
    """x: (N, C, H, W); weight: (1, 2, k, k); bias: (1,). Returns (N, 1, H, W)."""
    N, C, H, W = x.shape
    k = kernel_size
    p = (k - 1) // 2
    assert weight.shape == (1, 2, k, k)

    HW = H * W
    # Padded flat length: >= HW + p*(W+1) so shifted reads land on the map or on
    # zeros; multiple of 128 (lane aligned) and of W (keeps column masks exact).
    PADLEN = -(-(HW + p * (W + 1)) // 128) * 128
    while PADLEN % W != 0:
        PADLEN += 128

    x_flat = x.reshape(N, C, HW)                       # lane-dense layout
    w_flat = weight.reshape(-1).astype(jnp.float32)    # (2*k*k,)
    b = bias.astype(jnp.float32)                       # (1,)

    # Batch block: keep the double-buffered input tile within a modest VMEM
    # budget (safe on v7x's 64 MiB) and cap B_blk so the conv temporaries
    # (~10 x B_blk x PADLEN f32 arrays) stay near the vreg file.
    itemsize = jnp.dtype(x.dtype).itemsize
    budget = 2 * 1024 * 1024
    B_blk = int(max(1, min(N, budget // max(1, C * HW * itemsize), 16)))
    grid = (pl.cdiv(N, B_blk),)

    kernel = functools.partial(_spatial_attention_kernel, k=k, W=W, PADLEN=PADLEN)

    cost = pl.CostEstimate(
        flops=2 * N * HW * (C + 2 * k * k),
        transcendentals=N * HW,
        bytes_accessed=N * C * HW * itemsize + N * HW * itemsize + (2 * k * k + 1) * 4,
    )

    out_flat = pl.pallas_call(
        kernel,
        out_shape=jax.ShapeDtypeStruct((N, 1, HW), x.dtype),
        grid=grid,
        in_specs=[
            pl.BlockSpec(memory_space=pltpu.SMEM),                 # conv weight
            pl.BlockSpec(memory_space=pltpu.SMEM),                 # conv bias
            pl.BlockSpec((B_blk, C, HW), lambda n: (n, 0, 0)),     # x block
        ],
        out_specs=pl.BlockSpec((B_blk, 1, HW), lambda n: (n, 0, 0)),
        compiler_params=pltpu.CompilerParams(dimension_semantics=("parallel",)),
        cost_estimate=cost,
    )(w_flat, b, x_flat)

    return out_flat.reshape(N, 1, H, W)


def _reference(x, weight, bias, kernel_size):
    """Pure-JAX reference mirroring the PyTorch forward, for verification."""
    p = (kernel_size - 1) // 2
    max_map = jnp.max(x, axis=1, keepdims=True)
    avg_map = jnp.mean(x, axis=1, keepdims=True)
    cat = jnp.concatenate([max_map, avg_map], axis=1)       # (N, 2, H, W)
    conv = jax.lax.conv_general_dilated(
        cat, weight,
        window_strides=(1, 1),
        padding=((p, p), (p, p)),
        dimension_numbers=("NCHW", "OIHW", "NCHW"),
    ) + bias.reshape(1, 1, 1, 1)
    return jax.nn.sigmoid(conv)


if __name__ == "__main__":
    key = jax.random.PRNGKey(0)
    kx, kw, kb = jax.random.split(key, 3)

    N, C, H, W = 2, 4, 16, 16
    kernel_size = 7                      # typical CBAM spatial-attention kernel
    fan_in = 2 * kernel_size * kernel_size
    bound = 1.0 / (fan_in ** 0.5)

    x = jax.random.normal(kx, (N, C, H, W), dtype=jnp.float32)
    weight = jax.random.uniform(kw, (1, 2, kernel_size, kernel_size),
                                dtype=jnp.float32, minval=-bound, maxval=bound)
    bias = jax.random.uniform(kb, (1,), dtype=jnp.float32,
                              minval=-bound, maxval=bound)

    out = spatial_attention(x, weight, bias, kernel_size)
    out = jax.block_until_ready(out)

    ref = jax.block_until_ready(_reference(x, weight, bias, kernel_size))
    assert out.shape == (N, 1, H, W)
    assert jnp.allclose(out, ref, atol=1e-5, rtol=1e-5)

    print("KERNEL_OK")
</pallas_src>

<mosaic_0001>
module attributes {stable_mosaic.version = 11 : i64} {
  func.func @_spatial_attention_kernel(%arg0: i32, %arg1: memref<98xf32, #tpu.memory_space<smem>>, %arg2: memref<1xf32, #tpu.memory_space<smem>>, %arg3: memref<2x4x256xf32, #tpu.memory_space<vmem>>, %arg4: memref<2x1x256xf32, #tpu.memory_space<vmem>>) attributes {dimension_semantics = [#tpu.dimension_semantics<parallel>], iteration_bounds = array<i64: 1>, scalar_prefetch = 0 : i64, scratch_operands = 0 : i64, tpu.core_type = #tpu.core_type<tc>, window_params = [{transform_indices = @transform_0, window_bounds = array<i64: 98>}, {transform_indices = @transform_1, window_bounds = array<i64: 1>}, {transform_indices = @transform_2, window_bounds = array<i64: 2, 4, 256>}, {transform_indices = @transform_3, window_bounds = array<i64: 2, 1, 256>}]} {
    %c0 = arith.constant 0 : index
    %c0_0 = arith.constant 0 : index
    %c0_1 = arith.constant 0 : index
    %0 = vector.load %arg3[%c0, %c0_0, %c0_1] : memref<2x4x256xf32, #tpu.memory_space<vmem>>, vector<2x4x256xf32>
    %cst = arith.constant dense<0xFF800000> : vector<2x256xf32>
    %1 = vector.multi_reduction <maximumf>, %0, %cst [1] : vector<2x4x256xf32> to vector<2x256xf32>
    %cst_2 = arith.constant dense<0.000000e+00> : vector<2x256xf32>
    %2 = vector.multi_reduction <add>, %0, %cst_2 [1] : vector<2x4x256xf32> to vector<2x256xf32>
    %cst_3 = arith.constant 2.500000e-01 : f32
    %3 = vector.broadcast %cst_3 : f32 to vector<2x256xf32>
    %4 = arith.mulf %2, %3 : vector<2x256xf32>
    %cst_4 = arith.constant 0.000000e+00 : f32
    %5 = vector.broadcast %cst_4 : f32 to vector<2x128xf32>
    %6 = tpu.concatenate %1, %5 in 1 : vector<2x256xf32>, vector<2x128xf32> -> vector<2x384xf32>
    %7 = tpu.concatenate %4, %5 in 1 : vector<2x256xf32>, vector<2x128xf32> -> vector<2x384xf32>
    %8 = tpu.iota {dimensions = array<i32: 1>} : vector<2x384xi32>
    %c15_i32 = arith.constant 15 : i32
    %9 = vector.broadcast %c15_i32 : i32 to vector<2x384xi32>
    %10 = arith.andi %8, %9 : vector<2x384xi32>
    %c3_i32 = arith.constant 3 : i32
    %11 = tpu.dynamic_rotate %6 by %c3_i32 dim 1 : vector<2x384xf32>, i32 -> vector<2x384xf32>
    %c3_i32_5 = arith.constant 3 : i32
    %12 = vector.broadcast %c3_i32_5 : i32 to vector<2x384xi32>
    %13 = arith.cmpi sge, %10, %12 : vector<2x384xi32>
    %cst_6 = arith.constant 0.000000e+00 : f32
    %14 = vector.broadcast %cst_6 : f32 to vector<2x384xf32>
    %15 = arith.select %13, %11, %14 : vector<2x384xi1>, vector<2x384xf32>
    %c0_7 = arith.constant 0 : index
    %16 = memref.load %arg1[%c0_7] : memref<98xf32, #tpu.memory_space<smem>>
    %17 = vector.broadcast %16 : f32 to vector<2x384xf32>
    %18 = arith.mulf %15, %17 : vector<2x384xf32>
    %c7 = arith.constant 7 : index
    %19 = memref.load %arg1[%c7] : memref<98xf32, #tpu.memory_space<smem>>
    %20 = vector.broadcast %19 : f32 to vector<2x384xf32>
    %21 = arith.mulf %15, %20 : vector<2x384xf32>
    %c14 = arith.constant 14 : index
    %22 = memref.load %arg1[%c14] : memref<98xf32, #tpu.memory_space<smem>>
    %23 = vector.broadcast %22 : f32 to vector<2x384xf32>
    %24 = arith.mulf %15, %23 : vector<2x384xf32>
    %c21 = arith.constant 21 : index
    %25 = memref.load %arg1[%c21] : memref<98xf32, #tpu.memory_space<smem>>
    %26 = vector.broadcast %25 : f32 to vector<2x384xf32>
    %27 = arith.mulf %15, %26 : vector<2x384xf32>
    %c28 = arith.constant 28 : index
    %28 = memref.load %arg1[%c28] : memref<98xf32, #tpu.memory_space<smem>>
    %29 = vector.broadcast %28 : f32 to vector<2x384xf32>
    %30 = arith.mulf %15, %29 : vector<2x384xf32>
    %c35 = arith.constant 35 : index
    %31 = memref.load %arg1[%c35] : memref<98xf32, #tpu.memory_space<smem>>
    %32 = vector.broadcast %31 : f32 to vector<2x384xf32>
    %33 = arith.mulf %15, %32 : vector<2x384xf32>
    %c42 = arith.constant 42 : index
    %34 = memref.load %arg1[%c42] : memref<98xf32, #tpu.memory_space<smem>>
    %35 = vector.broadcast %34 : f32 to vector<2x384xf32>
    %36 = arith.mulf %15, %35 : vector<2x384xf32>
    %c2_i32 = arith.constant 2 : i32
    %37 = tpu.dynamic_rotate %6 by %c2_i32 dim 1 : vector<2x384xf32>, i32 -> vector<2x384xf32>
    %c2_i32_8 = arith.constant 2 : i32
    %38 = vector.broadcast %c2_i32_8 : i32 to vector<2x384xi32>
    %39 = arith.cmpi sge, %10, %38 : vector<2x384xi32>
    %cst_9 = arith.constant 0.000000e+00 : f32
    %40 = vector.broadcast %cst_9 : f32 to vector<2x384xf32>
    %41 = arith.select %39, %37, %40 : vector<2x384xi1>, vector<2x384xf32>
    %c1 = arith.constant 1 : index
    %42 = memref.load %arg1[%c1] : memref<98xf32, #tpu.memory_space<smem>>
    %43 = vector.broadcast %42 : f32 to vector<2x384xf32>
    %44 = arith.mulf %41, %43 : vector<2x384xf32>
    %45 = arith.addf %18, %44 : vector<2x384xf32>
    %c8 = arith.constant 8 : index
    %46 = memref.load %arg1[%c8] : memref<98xf32, #tpu.memory_space<smem>>
    %47 = vector.broadcast %46 : f32 to vector<2x384xf32>
    %48 = arith.mulf %41, %47 : vector<2x384xf32>
    %49 = arith.addf %21, %48 : vector<2x384xf32>
    %c15 = arith.constant 15 : index
    %50 = memref.load %arg1[%c15] : memref<98xf32, #tpu.memory_space<smem>>
    %51 = vector.broadcast %50 : f32 to vector<2x384xf32>
    %52 = arith.mulf %41, %51 : vector<2x384xf32>
    %53 = arith.addf %24, %52 : vector<2x384xf32>
    %c22 = arith.constant 22 : index
    %54 = memref.load %arg1[%c22] : memref<98xf32, #tpu.memory_space<smem>>
    %55 = vector.broadcast %54 : f32 to vector<2x384xf32>
    %56 = arith.mulf %41, %55 : vector<2x384xf32>
    %57 = arith.addf %27, %56 : vector<2x384xf32>
    %c29 = arith.constant 29 : index
    %58 = memref.load %arg1[%c29] : memref<98xf32, #tpu.memory_space<smem>>
    %59 = vector.broadcast %58 : f32 to vector<2x384xf32>
    %60 = arith.mulf %41, %59 : vector<2x384xf32>
    %61 = arith.addf %30, %60 : vector<2x384xf32>
    %c36 = arith.constant 36 : index
    %62 = memref.load %arg1[%c36] : memref<98xf32, #tpu.memory_space<smem>>
    %63 = vector.broadcast %62 : f32 to vector<2x384xf32>
    %64 = arith.mulf %41, %63 : vector<2x384xf32>
    %65 = arith.addf %33, %64 : vector<2x384xf32>
    %c43 = arith.constant 43 : index
    %66 = memref.load %arg1[%c43] : memref<98xf32, #tpu.memory_space<smem>>
    %67 = vector.broadcast %66 : f32 to vector<2x384xf32>
    %68 = arith.mulf %41, %67 : vector<2x384xf32>
    %69 = arith.addf %36, %68 : vector<2x384xf32>
    %c1_i32 = arith.constant 1 : i32
    %70 = tpu.dynamic_rotate %6 by %c1_i32 dim 1 : vector<2x384xf32>, i32 -> vector<2x384xf32>
    %c1_i32_10 = arith.constant 1 : i32
    %71 = vector.broadcast %c1_i32_10 : i32 to vector<2x384xi32>
    %72 = arith.cmpi sge, %10, %71 : vector<2x384xi32>
    %cst_11 = arith.constant 0.000000e+00 : f32
    %73 = vector.broadcast %cst_11 : f32 to vector<2x384xf32>
    %74 = arith.select %72, %70, %73 : vector<2x384xi1>, vector<2x384xf32>
    %c2 = arith.constant 2 : index
    %75 = memref.load %arg1[%c2] : memref<98xf32, #tpu.memory_space<smem>>
    %76 = vector.broadcast %75 : f32 to vector<2x384xf32>
    %77 = arith.mulf %74, %76 : vector<2x384xf32>
    %78 = arith.addf %45, %77 : vector<2x384xf32>
    %c9 = arith.constant 9 : index
    %79 = memref.load %arg1[%c9] : memref<98xf32, #tpu.memory_space<smem>>
    %80 = vector.broadcast %79 : f32 to vector<2x384xf32>
    %81 = arith.mulf %74, %80 : vector<2x384xf32>
    %82 = arith.addf %49, %81 : vector<2x384xf32>
    %c16 = arith.constant 16 : index
    %83 = memref.load %arg1[%c16] : memref<98xf32, #tpu.memory_space<smem>>
    %84 = vector.broadcast %83 : f32 to vector<2x384xf32>
    %85 = arith.mulf %74, %84 : vector<2x384xf32>
    %86 = arith.addf %53, %85 : vector<2x384xf32>
    %c23 = arith.constant 23 : index
    %87 = memref.load %arg1[%c23] : memref<98xf32, #tpu.memory_space<smem>>
    %88 = vector.broadcast %87 : f32 to vector<2x384xf32>
    %89 = arith.mulf %74, %88 : vector<2x384xf32>
    %90 = arith.addf %57, %89 : vector<2x384xf32>
    %c30 = arith.constant 30 : index
    %91 = memref.load %arg1[%c30] : memref<98xf32, #tpu.memory_space<smem>>
    %92 = vector.broadcast %91 : f32 to vector<2x384xf32>
    %93 = arith.mulf %74, %92 : vector<2x384xf32>
    %94 = arith.addf %61, %93 : vector<2x384xf32>
    %c37 = arith.constant 37 : index
    %95 = memref.load %arg1[%c37] : memref<98xf32, #tpu.memory_space<smem>>
    %96 = vector.broadcast %95 : f32 to vector<2x384xf32>
    %97 = arith.mulf %74, %96 : vector<2x384xf32>
    %98 = arith.addf %65, %97 : vector<2x384xf32>
    %c44 = arith.constant 44 : index
    %99 = memref.load %arg1[%c44] : memref<98xf32, #tpu.memory_space<smem>>
    %100 = vector.broadcast %99 : f32 to vector<2x384xf32>
    %101 = arith.mulf %74, %100 : vector<2x384xf32>
    %102 = arith.addf %69, %101 : vector<2x384xf32>
    %c3 = arith.constant 3 : index
    %103 = memref.load %arg1[%c3] : memref<98xf32, #tpu.memory_space<smem>>
    %104 = vector.broadcast %103 : f32 to vector<2x384xf32>
    %105 = arith.mulf %6, %104 : vector<2x384xf32>
    %106 = arith.addf %78, %105 : vector<2x384xf32>
    %c10 = arith.constant 10 : index
    %107 = memref.load %arg1[%c10] : memref<98xf32, #tpu.memory_space<smem>>
    %108 = vector.broadcast %107 : f32 to vector<2x384xf32>
    %109 = arith.mulf %6, %108 : vector<2x384xf32>
    %110 = arith.addf %82, %109 : vector<2x384xf32>
    %c17 = arith.constant 17 : index
    %111 = memref.load %arg1[%c17] : memref<98xf32, #tpu.memory_space<smem>>
    %112 = vector.broadcast %111 : f32 to vector<2x384xf32>
    %113 = arith.mulf %6, %112 : vector<2x384xf32>
    %114 = arith.addf %86, %113 : vector<2x384xf32>
    %c24 = arith.constant 24 : index
    %115 = memref.load %arg1[%c24] : memref<98xf32, #tpu.memory_space<smem>>
    %116 = vector.broadcast %115 : f32 to vector<2x384xf32>
    %117 = arith.mulf %6, %116 : vector<2x384xf32>
    %118 = arith.addf %90, %117 : vector<2x384xf32>
    %c31 = arith.constant 31 : index
    %119 = memref.load %arg1[%c31] : memref<98xf32, #tpu.memory_space<smem>>
    %120 = vector.broadcast %119 : f32 to vector<2x384xf32>
    %121 = arith.mulf %6, %120 : vector<2x384xf32>
    %122 = arith.addf %94, %121 : vector<2x384xf32>
    %c38 = arith.constant 38 : index
    %123 = memref.load %arg1[%c38] : memref<98xf32, #tpu.memory_space<smem>>
    %124 = vector.broadcast %123 : f32 to vector<2x384xf32>
    %125 = arith.mulf %6, %124 : vector<2x384xf32>
    %126 = arith.addf %98, %125 : vector<2x384xf32>
    %c45 = arith.constant 45 : index
    %127 = memref.load %arg1[%c45] : memref<98xf32, #tpu.memory_space<smem>>
    %128 = vector.broadcast %127 : f32 to vector<2x384xf32>
    %129 = arith.mulf %6, %128 : vector<2x384xf32>
    %130 = arith.addf %102, %129 : vector<2x384xf32>
    %c383_i32 = arith.constant 383 : i32
    %131 = tpu.dynamic_rotate %6 by %c383_i32 dim 1 : vector<2x384xf32>, i32 -> vector<2x384xf32>
    %c15_i32_12 = arith.constant 15 : i32
    %132 = vector.broadcast %c15_i32_12 : i32 to vector<2x384xi32>
    %133 = arith.cmpi slt, %10, %132 : vector<2x384xi32>
    %cst_13 = arith.constant 0.000000e+00 : f32
    %134 = vector.broadcast %cst_13 : f32 to vector<2x384xf32>
    %135 = arith.select %133, %131, %134 : vector<2x384xi1>, vector<2x384xf32>
    %c4 = arith.constant 4 : index
    %136 = memref.load %arg1[%c4] : memref<98xf32, #tpu.memory_space<smem>>
    %137 = vector.broadcast %136 : f32 to vector<2x384xf32>
    %138 = arith.mulf %135, %137 : vector<2x384xf32>
    %139 = arith.addf %106, %138 : vector<2x384xf32>
    %c11 = arith.constant 11 : index
    %140 = memref.load %arg1[%c11] : memref<98xf32, #tpu.memory_space<smem>>
    %141 = vector.broadcast %140 : f32 to vector<2x384xf32>
    %142 = arith.mulf %135, %141 : vector<2x384xf32>
    %143 = arith.addf %110, %142 : vector<2x384xf32>
    %c18 = arith.constant 18 : index
    %144 = memref.load %arg1[%c18] : memref<98xf32, #tpu.memory_space<smem>>
    %145 = vector.broadcast %144 : f32 to vector<2x384xf32>
    %146 = arith.mulf %135, %145 : vector<2x384xf32>
    %147 = arith.addf %114, %146 : vector<2x384xf32>
    %c25 = arith.constant 25 : index
    %148 = memref.load %arg1[%c25] : memref<98xf32, #tpu.memory_space<smem>>
    %149 = vector.broadcast %148 : f32 to vector<2x384xf32>
    %150 = arith.mulf %135, %149 : vector<2x384xf32>
    %151 = arith.addf %118, %150 : vector<2x384xf32>
    %c32 = arith.constant 32 : index
    %152 = memref.load %arg1[%c32] : memref<98xf32, #tpu.memory_space<smem>>
    %153 = vector.broadcast %152 : f32 to vector<2x384xf32>
    %154 = arith.mulf %135, %153 : vector<2x384xf32>
    %155 = arith.addf %122, %154 : vector<2x384xf32>
    %c39 = arith.constant 39 : index
    %156 = memref.load %arg1[%c39] : memref<98xf32, #tpu.memory_space<smem>>
    %157 = vector.broadcast %156 : f32 to vector<2x384xf32>
    %158 = arith.mulf %135, %157 : vector<2x384xf32>
    %159 = arith.addf %126, %158 : vector<2x384xf32>
    %c46 = arith.constant 46 : index
    %160 = memref.load %arg1[%c46] : memref<98xf32, #tpu.memory_space<smem>>
    %161 = vector.broadcast %160 : f32 to vector<2x384xf32>
    %162 = arith.mulf %135, %161 : vector<2x384xf32>
    %163 = arith.addf %130, %162 : vector<2x384xf32>
    %c382_i32 = arith.constant 382 : i32
    %164 = tpu.dynamic_rotate %6 by %c382_i32 dim 1 : vector<2x384xf32>, i32 -> vector<2x384xf32>
    %c14_i32 = arith.constant 14 : i32
    %165 = vector.broadcast %c14_i32 : i32 to vector<2x384xi32>
    %166 = arith.cmpi slt, %10, %165 : vector<2x384xi32>
    %cst_14 = arith.constant 0.000000e+00 : f32
    %167 = vector.broadcast %cst_14 : f32 to vector<2x384xf32>
    %168 = arith.select %166, %164, %167 : vector<2x384xi1>, vector<2x384xf32>
    %c5 = arith.constant 5 : index
    %169 = memref.load %arg1[%c5] : memref<98xf32, #tpu.memory_space<smem>>
    %170 = vector.broadcast %169 : f32 to vector<2x384xf32>
    %171 = arith.mulf %168, %170 : vector<2x384xf32>
    %172 = arith.addf %139, %171 : vector<2x384xf32>
    %c12 = arith.constant 12 : index
    %173 = memref.load %arg1[%c12] : memref<98xf32, #tpu.memory_space<smem>>
    %174 = vector.broadcast %173 : f32 to vector<2x384xf32>
    %175 = arith.mulf %168, %174 : vector<2x384xf32>
    %176 = arith.addf %143, %175 : vector<2x384xf32>
    %c19 = arith.constant 19 : index
    %177 = memref.load %arg1[%c19] : memref<98xf32, #tpu.memory_space<smem>>
    %178 = vector.broadcast %177 : f32 to vector<2x384xf32>
    %179 = arith.mulf %168, %178 : vector<2x384xf32>
    %180 = arith.addf %147, %179 : vector<2x384xf32>
    %c26 = arith.constant 26 : index
    %181 = memref.load %arg1[%c26] : memref<98xf32, #tpu.memory_space<smem>>
    %182 = vector.broadcast %181 : f32 to vector<2x384xf32>
    %183 = arith.mulf %168, %182 : vector<2x384xf32>
    %184 = arith.addf %151, %183 : vector<2x384xf32>
    %c33 = arith.constant 33 : index
    %185 = memref.load %arg1[%c33] : memref<98xf32, #tpu.memory_space<smem>>
    %186 = vector.broadcast %185 : f32 to vector<2x384xf32>
    %187 = arith.mulf %168, %186 : vector<2x384xf32>
    %188 = arith.addf %155, %187 : vector<2x384xf32>
    %c40 = arith.constant 40 : index
    %189 = memref.load %arg1[%c40] : memref<98xf32, #tpu.memory_space<smem>>
    %190 = vector.broadcast %189 : f32 to vector<2x384xf32>
    %191 = arith.mulf %168, %190 : vector<2x384xf32>
    %192 = arith.addf %159, %191 : vector<2x384xf32>
    %c47 = arith.constant 47 : index
    %193 = memref.load %arg1[%c47] : memref<98xf32, #tpu.memory_space<smem>>
    %194 = vector.broadcast %193 : f32 to vector<2x384xf32>
    %195 = arith.mulf %168, %194 : vector<2x384xf32>
    %196 = arith.addf %163, %195 : vector<2x384xf32>
    %c381_i32 = arith.constant 381 : i32
    %197 = tpu.dynamic_rotate %6 by %c381_i32 dim 1 : vector<2x384xf32>, i32 -> vector<2x384xf32>
    %c13_i32 = arith.constant 13 : i32
    %198 = vector.broadcast %c13_i32 : i32 to vector<2x384xi32>
    %199 = arith.cmpi slt, %10, %198 : vector<2x384xi32>
    %cst_15 = arith.constant 0.000000e+00 : f32
    %200 = vector.broadcast %cst_15 : f32 to vector<2x384xf32>
    %201 = arith.select %199, %197, %200 : vector<2x384xi1>, vector<2x384xf32>
    %c6 = arith.constant 6 : index
    %202 = memref.load %arg1[%c6] : memref<98xf32, #tpu.memory_space<smem>>
    %203 = vector.broadcast %202 : f32 to vector<2x384xf32>
    %204 = arith.mulf %201, %203 : vector<2x384xf32>
    %205 = arith.addf %172, %204 : vector<2x384xf32>
    %c13 = arith.constant 13 : index
    %206 = memref.load %arg1[%c13] : memref<98xf32, #tpu.memory_space<smem>>
    %207 = vector.broadcast %206 : f32 to vector<2x384xf32>
    %208 = arith.mulf %201, %207 : vector<2x384xf32>
    %209 = arith.addf %176, %208 : vector<2x384xf32>
    %c20 = arith.constant 20 : index
    %210 = memref.load %arg1[%c20] : memref<98xf32, #tpu.memory_space<smem>>
    %211 = vector.broadcast %210 : f32 to vector<2x384xf32>
    %212 = arith.mulf %201, %211 : vector<2x384xf32>
    %213 = arith.addf %180, %212 : vector<2x384xf32>
    %c27 = arith.constant 27 : index
    %214 = memref.load %arg1[%c27] : memref<98xf32, #tpu.memory_space<smem>>
    %215 = vector.broadcast %214 : f32 to vector<2x384xf32>
    %216 = arith.mulf %201, %215 : vector<2x384xf32>
    %217 = arith.addf %184, %216 : vector<2x384xf32>
    %c34 = arith.constant 34 : index
    %218 = memref.load %arg1[%c34] : memref<98xf32, #tpu.memory_space<smem>>
    %219 = vector.broadcast %218 : f32 to vector<2x384xf32>
    %220 = arith.mulf %201, %219 : vector<2x384xf32>
    %221 = arith.addf %188, %220 : vector<2x384xf32>
    %c41 = arith.constant 41 : index
    %222 = memref.load %arg1[%c41] : memref<98xf32, #tpu.memory_space<smem>>
    %223 = vector.broadcast %222 : f32 to vector<2x384xf32>
    %224 = arith.mulf %201, %223 : vector<2x384xf32>
    %225 = arith.addf %192, %224 : vector<2x384xf32>
    %c48 = arith.constant 48 : index
    %226 = memref.load %arg1[%c48] : memref<98xf32, #tpu.memory_space<smem>>
    %227 = vector.broadcast %226 : f32 to vector<2x384xf32>
    %228 = arith.mulf %201, %227 : vector<2x384xf32>
    %229 = arith.addf %196, %228 : vector<2x384xf32>
    %c3_i32_16 = arith.constant 3 : i32
    %230 = tpu.dynamic_rotate %7 by %c3_i32_16 dim 1 : vector<2x384xf32>, i32 -> vector<2x384xf32>
    %c3_i32_17 = arith.constant 3 : i32
    %231 = vector.broadcast %c3_i32_17 : i32 to vector<2x384xi32>
    %232 = arith.cmpi sge, %10, %231 : vector<2x384xi32>
    %cst_18 = arith.constant 0.000000e+00 : f32
    %233 = vector.broadcast %cst_18 : f32 to vector<2x384xf32>
    %234 = arith.select %232, %230, %233 : vector<2x384xi1>, vector<2x384xf32>
    %c49 = arith.constant 49 : index
    %235 = memref.load %arg1[%c49] : memref<98xf32, #tpu.memory_space<smem>>
    %236 = vector.broadcast %235 : f32 to vector<2x384xf32>
    %237 = arith.mulf %234, %236 : vector<2x384xf32>
    %238 = arith.addf %205, %237 : vector<2x384xf32>
    %c56 = arith.constant 56 : index
    %239 = memref.load %arg1[%c56] : memref<98xf32, #tpu.memory_space<smem>>
    %240 = vector.broadcast %239 : f32 to vector<2x384xf32>
    %241 = arith.mulf %234, %240 : vector<2x384xf32>
    %242 = arith.addf %209, %241 : vector<2x384xf32>
    %c63 = arith.constant 63 : index
    %243 = memref.load %arg1[%c63] : memref<98xf32, #tpu.memory_space<smem>>
    %244 = vector.broadcast %243 : f32 to vector<2x384xf32>
    %245 = arith.mulf %234, %244 : vector<2x384xf32>
    %246 = arith.addf %213, %245 : vector<2x384xf32>
    %c70 = arith.constant 70 : index
    %247 = memref.load %arg1[%c70] : memref<98xf32, #tpu.memory_space<smem>>
    %248 = vector.broadcast %247 : f32 to vector<2x384xf32>
    %249 = arith.mulf %234, %248 : vector<2x384xf32>
    %250 = arith.addf %217, %249 : vector<2x384xf32>
    %c77 = arith.constant 77 : index
    %251 = memref.load %arg1[%c77] : memref<98xf32, #tpu.memory_space<smem>>
    %252 = vector.broadcast %251 : f32 to vector<2x384xf32>
    %253 = arith.mulf %234, %252 : vector<2x384xf32>
    %254 = arith.addf %221, %253 : vector<2x384xf32>
    %c84 = arith.constant 84 : index
    %255 = memref.load %arg1[%c84] : memref<98xf32, #tpu.memory_space<smem>>
    %256 = vector.broadcast %255 : f32 to vector<2x384xf32>
    %257 = arith.mulf %234, %256 : vector<2x384xf32>
    %258 = arith.addf %225, %257 : vector<2x384xf32>
    %c91 = arith.constant 91 : index
    %259 = memref.load %arg1[%c91] : memref<98xf32, #tpu.memory_space<smem>>
    %260 = vector.broadcast %259 : f32 to vector<2x384xf32>
    %261 = arith.mulf %234, %260 : vector<2x384xf32>
    %262 = arith.addf %229, %261 : vector<2x384xf32>
    %c2_i32_19 = arith.constant 2 : i32
    %263 = tpu.dynamic_rotate %7 by %c2_i32_19 dim 1 : vector<2x384xf32>, i32 -> vector<2x384xf32>
    %c2_i32_20 = arith.constant 2 : i32
    %264 = vector.broadcast %c2_i32_20 : i32 to vector<2x384xi32>
    %265 = arith.cmpi sge, %10, %264 : vector<2x384xi32>
    %cst_21 = arith.constant 0.000000e+00 : f32
    %266 = vector.broadcast %cst_21 : f32 to vector<2x384xf32>
    %267 = arith.select %265, %263, %266 : vector<2x384xi1>, vector<2x384xf32>
    %c50 = arith.constant 50 : index
    %268 = memref.load %arg1[%c50] : memref<98xf32, #tpu.memory_space<smem>>
    %269 = vector.broadcast %268 : f32 to vector<2x384xf32>
    %270 = arith.mulf %267, %269 : vector<2x384xf32>
    %271 = arith.addf %238, %270 : vector<2x384xf32>
    %c57 = arith.constant 57 : index
    %272 = memref.load %arg1[%c57] : memref<98xf32, #tpu.memory_space<smem>>
    %273 = vector.broadcast %272 : f32 to vector<2x384xf32>
    %274 = arith.mulf %267, %273 : vector<2x384xf32>
    %275 = arith.addf %242, %274 : vector<2x384xf32>
    %c64 = arith.constant 64 : index
    %276 = memref.load %arg1[%c64] : memref<98xf32, #tpu.memory_space<smem>>
    %277 = vector.broadcast %276 : f32 to vector<2x384xf32>
    %278 = arith.mulf %267, %277 : vector<2x384xf32>
    %279 = arith.addf %246, %278 : vector<2x384xf32>
    %c71 = arith.constant 71 : index
    %280 = memref.load %arg1[%c71] : memref<98xf32, #tpu.memory_space<smem>>
    %281 = vector.broadcast %280 : f32 to vector<2x384xf32>
    %282 = arith.mulf %267, %281 : vector<2x384xf32>
    %283 = arith.addf %250, %282 : vector<2x384xf32>
    %c78 = arith.constant 78 : index
    %284 = memref.load %arg1[%c78] : memref<98xf32, #tpu.memory_space<smem>>
    %285 = vector.broadcast %284 : f32 to vector<2x384xf32>
    %286 = arith.mulf %267, %285 : vector<2x384xf32>
    %287 = arith.addf %254, %286 : vector<2x384xf32>
    %c85 = arith.constant 85 : index
    %288 = memref.load %arg1[%c85] : memref<98xf32, #tpu.memory_space<smem>>
    %289 = vector.broadcast %288 : f32 to vector<2x384xf32>
    %290 = arith.mulf %267, %289 : vector<2x384xf32>
    %291 = arith.addf %258, %290 : vector<2x384xf32>
    %c92 = arith.constant 92 : index
    %292 = memref.load %arg1[%c92] : memref<98xf32, #tpu.memory_space<smem>>
    %293 = vector.broadcast %292 : f32 to vector<2x384xf32>
    %294 = arith.mulf %267, %293 : vector<2x384xf32>
    %295 = arith.addf %262, %294 : vector<2x384xf32>
    %c1_i32_22 = arith.constant 1 : i32
    %296 = tpu.dynamic_rotate %7 by %c1_i32_22 dim 1 : vector<2x384xf32>, i32 -> vector<2x384xf32>
    %c1_i32_23 = arith.constant 1 : i32
    %297 = vector.broadcast %c1_i32_23 : i32 to vector<2x384xi32>
    %298 = arith.cmpi sge, %10, %297 : vector<2x384xi32>
    %cst_24 = arith.constant 0.000000e+00 : f32
    %299 = vector.broadcast %cst_24 : f32 to vector<2x384xf32>
    %300 = arith.select %298, %296, %299 : vector<2x384xi1>, vector<2x384xf32>
    %c51 = arith.constant 51 : index
    %301 = memref.load %arg1[%c51] : memref<98xf32, #tpu.memory_space<smem>>
    %302 = vector.broadcast %301 : f32 to vector<2x384xf32>
    %303 = arith.mulf %300, %302 : vector<2x384xf32>
    %304 = arith.addf %271, %303 : vector<2x384xf32>
    %c58 = arith.constant 58 : index
    %305 = memref.load %arg1[%c58] : memref<98xf32, #tpu.memory_space<smem>>
    %306 = vector.broadcast %305 : f32 to vector<2x384xf32>
    %307 = arith.mulf %300, %306 : vector<2x384xf32>
    %308 = arith.addf %275, %307 : vector<2x384xf32>
    %c65 = arith.constant 65 : index
    %309 = memref.load %arg1[%c65] : memref<98xf32, #tpu.memory_space<smem>>
    %310 = vector.broadcast %309 : f32 to vector<2x384xf32>
    %311 = arith.mulf %300, %310 : vector<2x384xf32>
    %312 = arith.addf %279, %311 : vector<2x384xf32>
    %c72 = arith.constant 72 : index
    %313 = memref.load %arg1[%c72] : memref<98xf32, #tpu.memory_space<smem>>
    %314 = vector.broadcast %313 : f32 to vector<2x384xf32>
    %315 = arith.mulf %300, %314 : vector<2x384xf32>
    %316 = arith.addf %283, %315 : vector<2x384xf32>
    %c79 = arith.constant 79 : index
    %317 = memref.load %arg1[%c79] : memref<98xf32, #tpu.memory_space<smem>>
    %318 = vector.broadcast %317 : f32 to vector<2x384xf32>
    %319 = arith.mulf %300, %318 : vector<2x384xf32>
    %320 = arith.addf %287, %319 : vector<2x384xf32>
    %c86 = arith.constant 86 : index
    %321 = memref.load %arg1[%c86] : memref<98xf32, #tpu.memory_space<smem>>
    %322 = vector.broadcast %321 : f32 to vector<2x384xf32>
    %323 = arith.mulf %300, %322 : vector<2x384xf32>
    %324 = arith.addf %291, %323 : vector<2x384xf32>
    %c93 = arith.constant 93 : index
    %325 = memref.load %arg1[%c93] : memref<98xf32, #tpu.memory_space<smem>>
    %326 = vector.broadcast %325 : f32 to vector<2x384xf32>
    %327 = arith.mulf %300, %326 : vector<2x384xf32>
    %328 = arith.addf %295, %327 : vector<2x384xf32>
    %c52 = arith.constant 52 : index
    %329 = memref.load %arg1[%c52] : memref<98xf32, #tpu.memory_space<smem>>
    %330 = vector.broadcast %329 : f32 to vector<2x384xf32>
    %331 = arith.mulf %7, %330 : vector<2x384xf32>
    %332 = arith.addf %304, %331 : vector<2x384xf32>
    %c59 = arith.constant 59 : index
    %333 = memref.load %arg1[%c59] : memref<98xf32, #tpu.memory_space<smem>>
    %334 = vector.broadcast %333 : f32 to vector<2x384xf32>
    %335 = arith.mulf %7, %334 : vector<2x384xf32>
    %336 = arith.addf %308, %335 : vector<2x384xf32>
    %c66 = arith.constant 66 : index
    %337 = memref.load %arg1[%c66] : memref<98xf32, #tpu.memory_space<smem>>
    %338 = vector.broadcast %337 : f32 to vector<2x384xf32>
    %339 = arith.mulf %7, %338 : vector<2x384xf32>
    %340 = arith.addf %312, %339 : vector<2x384xf32>
    %c73 = arith.constant 73 : index
    %341 = memref.load %arg1[%c73] : memref<98xf32, #tpu.memory_space<smem>>
    %342 = vector.broadcast %341 : f32 to vector<2x384xf32>
    %343 = arith.mulf %7, %342 : vector<2x384xf32>
    %344 = arith.addf %316, %343 : vector<2x384xf32>
    %c80 = arith.constant 80 : index
    %345 = memref.load %arg1[%c80] : memref<98xf32, #tpu.memory_space<smem>>
    %346 = vector.broadcast %345 : f32 to vector<2x384xf32>
    %347 = arith.mulf %7, %346 : vector<2x384xf32>
    %348 = arith.addf %320, %347 : vector<2x384xf32>
    %c87 = arith.constant 87 : index
    %349 = memref.load %arg1[%c87] : memref<98xf32, #tpu.memory_space<smem>>
    %350 = vector.broadcast %349 : f32 to vector<2x384xf32>
    %351 = arith.mulf %7, %350 : vector<2x384xf32>
    %352 = arith.addf %324, %351 : vector<2x384xf32>
    %c94 = arith.constant 94 : index
    %353 = memref.load %arg1[%c94] : memref<98xf32, #tpu.memory_space<smem>>
    %354 = vector.broadcast %353 : f32 to vector<2x384xf32>
    %355 = arith.mulf %7, %354 : vector<2x384xf32>
    %356 = arith.addf %328, %355 : vector<2x384xf32>
    %c383_i32_25 = arith.constant 383 : i32
    %357 = tpu.dynamic_rotate %7 by %c383_i32_25 dim 1 : vector<2x384xf32>, i32 -> vector<2x384xf32>
    %c15_i32_26 = arith.constant 15 : i32
    %358 = vector.broadcast %c15_i32_26 : i32 to vector<2x384xi32>
    %359 = arith.cmpi slt, %10, %358 : vector<2x384xi32>
    %cst_27 = arith.constant 0.000000e+00 : f32
    %360 = vector.broadcast %cst_27 : f32 to vector<2x384xf32>
    %361 = arith.select %359, %357, %360 : vector<2x384xi1>, vector<2x384xf32>
    %c53 = arith.constant 53 : index
    %362 = memref.load %arg1[%c53] : memref<98xf32, #tpu.memory_space<smem>>
    %363 = vector.broadcast %362 : f32 to vector<2x384xf32>
    %364 = arith.mulf %361, %363 : vector<2x384xf32>
    %365 = arith.addf %332, %364 : vector<2x384xf32>
    %c60 = arith.constant 60 : index
    %366 = memref.load %arg1[%c60] : memref<98xf32, #tpu.memory_space<smem>>
    %367 = vector.broadcast %366 : f32 to vector<2x384xf32>
    %368 = arith.mulf %361, %367 : vector<2x384xf32>
    %369 = arith.addf %336, %368 : vector<2x384xf32>
    %c67 = arith.constant 67 : index
    %370 = memref.load %arg1[%c67] : memref<98xf32, #tpu.memory_space<smem>>
    %371 = vector.broadcast %370 : f32 to vector<2x384xf32>
    %372 = arith.mulf %361, %371 : vector<2x384xf32>
    %373 = arith.addf %340, %372 : vector<2x384xf32>
    %c74 = arith.constant 74 : index
    %374 = memref.load %arg1[%c74] : memref<98xf32, #tpu.memory_space<smem>>
    %375 = vector.broadcast %374 : f32 to vector<2x384xf32>
    %376 = arith.mulf %361, %375 : vector<2x384xf32>
    %377 = arith.addf %344, %376 : vector<2x384xf32>
    %c81 = arith.constant 81 : index
    %378 = memref.load %arg1[%c81] : memref<98xf32, #tpu.memory_space<smem>>
    %379 = vector.broadcast %378 : f32 to vector<2x384xf32>
    %380 = arith.mulf %361, %379 : vector<2x384xf32>
    %381 = arith.addf %348, %380 : vector<2x384xf32>
    %c88 = arith.constant 88 : index
    %382 = memref.load %arg1[%c88] : memref<98xf32, #tpu.memory_space<smem>>
    %383 = vector.broadcast %382 : f32 to vector<2x384xf32>
    %384 = arith.mulf %361, %383 : vector<2x384xf32>
    %385 = arith.addf %352, %384 : vector<2x384xf32>
    %c95 = arith.constant 95 : index
    %386 = memref.load %arg1[%c95] : memref<98xf32, #tpu.memory_space<smem>>
    %387 = vector.broadcast %386 : f32 to vector<2x384xf32>
    %388 = arith.mulf %361, %387 : vector<2x384xf32>
    %389 = arith.addf %356, %388 : vector<2x384xf32>
    %c382_i32_28 = arith.constant 382 : i32
    %390 = tpu.dynamic_rotate %7 by %c382_i32_28 dim 1 : vector<2x384xf32>, i32 -> vector<2x384xf32>
    %c14_i32_29 = arith.constant 14 : i32
    %391 = vector.broadcast %c14_i32_29 : i32 to vector<2x384xi32>
    %392 = arith.cmpi slt, %10, %391 : vector<2x384xi32>
    %cst_30 = arith.constant 0.000000e+00 : f32
    %393 = vector.broadcast %cst_30 : f32 to vector<2x384xf32>
    %394 = arith.select %392, %390, %393 : vector<2x384xi1>, vector<2x384xf32>
    %c54 = arith.constant 54 : index
    %395 = memref.load %arg1[%c54] : memref<98xf32, #tpu.memory_space<smem>>
    %396 = vector.broadcast %395 : f32 to vector<2x384xf32>
    %397 = arith.mulf %394, %396 : vector<2x384xf32>
    %398 = arith.addf %365, %397 : vector<2x384xf32>
    %c61 = arith.constant 61 : index
    %399 = memref.load %arg1[%c61] : memref<98xf32, #tpu.memory_space<smem>>
    %400 = vector.broadcast %399 : f32 to vector<2x384xf32>
    %401 = arith.mulf %394, %400 : vector<2x384xf32>
    %402 = arith.addf %369, %401 : vector<2x384xf32>
    %c68 = arith.constant 68 : index
    %403 = memref.load %arg1[%c68] : memref<98xf32, #tpu.memory_space<smem>>
    %404 = vector.broadcast %403 : f32 to vector<2x384xf32>
    %405 = arith.mulf %394, %404 : vector<2x384xf32>
    %406 = arith.addf %373, %405 : vector<2x384xf32>
    %c75 = arith.constant 75 : index
    %407 = memref.load %arg1[%c75] : memref<98xf32, #tpu.memory_space<smem>>
    %408 = vector.broadcast %407 : f32 to vector<2x384xf32>
    %409 = arith.mulf %394, %408 : vector<2x384xf32>
    %410 = arith.addf %377, %409 : vector<2x384xf32>
    %c82 = arith.constant 82 : index
    %411 = memref.load %arg1[%c82] : memref<98xf32, #tpu.memory_space<smem>>
    %412 = vector.broadcast %411 : f32 to vector<2x384xf32>
    %413 = arith.mulf %394, %412 : vector<2x384xf32>
    %414 = arith.addf %381, %413 : vector<2x384xf32>
    %c89 = arith.constant 89 : index
    %415 = memref.load %arg1[%c89] : memref<98xf32, #tpu.memory_space<smem>>
    %416 = vector.broadcast %415 : f32 to vector<2x384xf32>
    %417 = arith.mulf %394, %416 : vector<2x384xf32>
    %418 = arith.addf %385, %417 : vector<2x384xf32>
    %c96 = arith.constant 96 : index
    %419 = memref.load %arg1[%c96] : memref<98xf32, #tpu.memory_space<smem>>
    %420 = vector.broadcast %419 : f32 to vector<2x384xf32>
    %421 = arith.mulf %394, %420 : vector<2x384xf32>
    %422 = arith.addf %389, %421 : vector<2x384xf32>
    %c381_i32_31 = arith.constant 381 : i32
    %423 = tpu.dynamic_rotate %7 by %c381_i32_31 dim 1 : vector<2x384xf32>, i32 -> vector<2x384xf32>
    %c13_i32_32 = arith.constant 13 : i32
    %424 = vector.broadcast %c13_i32_32 : i32 to vector<2x384xi32>
    %425 = arith.cmpi slt, %10, %424 : vector<2x384xi32>
    %cst_33 = arith.constant 0.000000e+00 : f32
    %426 = vector.broadcast %cst_33 : f32 to vector<2x384xf32>
    %427 = arith.select %425, %423, %426 : vector<2x384xi1>, vector<2x384xf32>
    %c55 = arith.constant 55 : index
    %428 = memref.load %arg1[%c55] : memref<98xf32, #tpu.memory_space<smem>>
    %429 = vector.broadcast %428 : f32 to vector<2x384xf32>
    %430 = arith.mulf %427, %429 : vector<2x384xf32>
    %431 = arith.addf %398, %430 : vector<2x384xf32>
    %c62 = arith.constant 62 : index
    %432 = memref.load %arg1[%c62] : memref<98xf32, #tpu.memory_space<smem>>
    %433 = vector.broadcast %432 : f32 to vector<2x384xf32>
    %434 = arith.mulf %427, %433 : vector<2x384xf32>
    %435 = arith.addf %402, %434 : vector<2x384xf32>
    %c69 = arith.constant 69 : index
    %436 = memref.load %arg1[%c69] : memref<98xf32, #tpu.memory_space<smem>>
    %437 = vector.broadcast %436 : f32 to vector<2x384xf32>
    %438 = arith.mulf %427, %437 : vector<2x384xf32>
    %439 = arith.addf %406, %438 : vector<2x384xf32>
    %c76 = arith.constant 76 : index
    %440 = memref.load %arg1[%c76] : memref<98xf32, #tpu.memory_space<smem>>
    %441 = vector.broadcast %440 : f32 to vector<2x384xf32>
    %442 = arith.mulf %427, %441 : vector<2x384xf32>
    %443 = arith.addf %410, %442 : vector<2x384xf32>
    %c83 = arith.constant 83 : index
    %444 = memref.load %arg1[%c83] : memref<98xf32, #tpu.memory_space<smem>>
    %445 = vector.broadcast %444 : f32 to vector<2x384xf32>
    %446 = arith.mulf %427, %445 : vector<2x384xf32>
    %447 = arith.addf %414, %446 : vector<2x384xf32>
    %c90 = arith.constant 90 : index
    %448 = memref.load %arg1[%c90] : memref<98xf32, #tpu.memory_space<smem>>
    %449 = vector.broadcast %448 : f32 to vector<2x384xf32>
    %450 = arith.mulf %427, %449 : vector<2x384xf32>
    %451 = arith.addf %418, %450 : vector<2x384xf32>
    %c97 = arith.constant 97 : index
    %452 = memref.load %arg1[%c97] : memref<98xf32, #tpu.memory_space<smem>>
    %453 = vector.broadcast %452 : f32 to vector<2x384xf32>
    %454 = arith.mulf %427, %453 : vector<2x384xf32>
    %455 = arith.addf %422, %454 : vector<2x384xf32>
    %c48_i32 = arith.constant 48 : i32
    %456 = tpu.dynamic_rotate %431 by %c48_i32 dim 1 : vector<2x384xf32>, i32 -> vector<2x384xf32>
    %c32_i32 = arith.constant 32 : i32
    %457 = tpu.dynamic_rotate %435 by %c32_i32 dim 1 : vector<2x384xf32>, i32 -> vector<2x384xf32>
    %458 = arith.addf %456, %457 : vector<2x384xf32>
    %c16_i32 = arith.constant 16 : i32
    %459 = tpu.dynamic_rotate %439 by %c16_i32 dim 1 : vector<2x384xf32>, i32 -> vector<2x384xf32>
    %460 = arith.addf %458, %459 : vector<2x384xf32>
    %461 = arith.addf %460, %443 : vector<2x384xf32>
    %c368_i32 = arith.constant 368 : i32
    %462 = tpu.dynamic_rotate %447 by %c368_i32 dim 1 : vector<2x384xf32>, i32 -> vector<2x384xf32>
    %463 = arith.addf %461, %462 : vector<2x384xf32>
    %c352_i32 = arith.constant 352 : i32
    %464 = tpu.dynamic_rotate %451 by %c352_i32 dim 1 : vector<2x384xf32>, i32 -> vector<2x384xf32>
    %465 = arith.addf %463, %464 : vector<2x384xf32>
    %c336_i32 = arith.constant 336 : i32
    %466 = tpu.dynamic_rotate %455 by %c336_i32 dim 1 : vector<2x384xf32>, i32 -> vector<2x384xf32>
    %467 = arith.addf %465, %466 : vector<2x384xf32>
    %468 = vector.extract_strided_slice %467 {offsets = [0, 0], sizes = [2, 256], strides = [1, 1]} : vector<2x384xf32> to vector<2x256xf32>
    %c0_34 = arith.constant 0 : index
    %469 = memref.load %arg2[%c0_34] : memref<1xf32, #tpu.memory_space<smem>>
    %470 = vector.broadcast %469 : f32 to vector<2x256xf32>
    %471 = arith.addf %468, %470 : vector<2x256xf32>
    %472 = arith.negf %471 : vector<2x256xf32>
    %473 = math.exp %472 : vector<2x256xf32>
    %cst_35 = arith.constant 1.000000e+00 : f32
    %474 = vector.broadcast %cst_35 : f32 to vector<2x256xf32>
    %475 = arith.addf %474, %473 : vector<2x256xf32>
    %476 = arith.divf %474, %475 : vector<2x256xf32>
    %c0_36 = arith.constant 0 : index
    %c0_37 = arith.constant 0 : index
    %c0_38 = arith.constant 0 : index
    %477 = vector.load %arg4[%c0_36, %c0_37, %c0_38] : memref<2x1x256xf32, #tpu.memory_space<vmem>>, vector<2x1x256xf32>
    %478 = vector.shape_cast %477 : vector<2x1x256xf32> to vector<2x256xf32>
    %479 = vector.shape_cast %476 : vector<2x256xf32> to vector<2x1x256xf32>
    tpu.vector_store %arg4[%c0_36, %c0_37, %c0_38], %479 {strides = array<i32>} : memref<2x1x256xf32, #tpu.memory_space<vmem>>, vector<2x1x256xf32>,
    return
  }
  func.func @transform_0(%arg0: i32) -> i32 {
    %c0_i32 = arith.constant 0 : i32
    %c0_i32_0 = arith.constant 0 : i32
    return %c0_i32 : i32
  }
  func.func @transform_1(%arg0: i32) -> i32 {
    %c0_i32 = arith.constant 0 : i32
    %c0_i32_0 = arith.constant 0 : i32
    return %c0_i32 : i32
  }
  func.func @transform_2(%arg0: i32) -> (i32, i32, i32) {
    %c0_i32 = arith.constant 0 : i32
    %c0_i32_0 = arith.constant 0 : i32
    %c0_i32_1 = arith.constant 0 : i32
    return %arg0, %c0_i32, %c0_i32_0 : i32, i32, i32
  }
  func.func @transform_3(%arg0: i32) -> (i32, i32, i32) {
    %c0_i32 = arith.constant 0 : i32
    %c0_i32_0 = arith.constant 0 : i32
    %c0_i32_1 = arith.constant 0 : i32
    return %arg0, %c0_i32, %c0_i32_0 : i32, i32, i32
  }
}

</mosaic_0001>

<bundles_post_ra>
// kernel: tpu_custom_call.1
= control target key start
LH: loop header
LB: loop body
LE: loop exit
PB: predicated region body
PF: predicated region fallthrough
CT: control target
= control target key end

     0   :  { %s3067_s0 = inlined_call_operand.vmem [shape: f32[98], index: 0, kind: input, shape index: {}]   ;;  %s3068_s1 = inlined_call_operand.<no memory space> [shape: f32[1], index: 1, kind: input, shape index: {}]   ;;  %s3069_s2 = inlined_call_operand.hbm [shape: f32[2,4,256], index: 2, kind: input, shape index: {}]   ;;  %s3070_s3 = inlined_call_operand.hbm [shape: f32[2,1,256], index: 3, kind: output, shape index: {}]  }
   0x1   :  { %3177 = sst [smem:[#allocation147_spill]] %s3068_s1 }
   0x2   :  { %3178 = sst [smem:[#allocation148_spill]] %s3070_s3 }
   0x3   :  { %9 = vsyncpa [#allocation6], 0 }
   0x4   :  { %10 = vsyncpa [#allocation4], 0 }
   0x5   :  { %11 = vsyncpa [#allocation5], 0  ;;  %s18_s14 = sshll.u32 %s3067_s0, 4  ;;  %s19_s14 = int_to_ptr.vmem [resolvable:$true] %s18_s14 }
   0x6   :  { %s1289_s15 = scalar_lea.vmem %s19_s14, 16  ;;  %p1294_p1 = scmp.lt.s32.totalorder %s19_s14, %s19_s14 }
   0x7   :  { %p1290_p0 = scmp.ne.s32.totalorder %s19_s14, %s1289_s15  ;;  %p1295_p2 = scmp.lt.s32.totalorder %s1289_s15, %s1289_s15 }
   0x9   :  { %p1296_p3 = por %p1295_p2, %p1294_p1 }
   0xb   :  { %p1297_p4 = pnand %p1296_p3, %p1290_p0 }
   0xd   :  { %1300 = shalt.err (!%p1297_p4)
}
   0xe   :  { %s1351_s16 = smov [#allocation3]   ;;  %s1352_s17 = smov [#allocation7]  }
   0xf   :  { %21 = dma.vmem_to_smem %s19_s14, 16, %s1351_s16, [#allocation6]  }
  0x10   :  { %s29_s18 = sshll.u32 %s1352_s17, 4  ;;  %s1301_s21 = scalar_lea.hbm %s3069_s2, 256  ;;  %s30_s18 = int_to_ptr.vmem [resolvable:$true] %s29_s18 }
  0x11   :  { %p1302_p5 = scmp.ne.s32.totalorder %s3069_s2, %s1301_s21  ;;  %p1305_p6 = scmp.lt.u32.totalorder %s1301_s21, %s3069_s2 }
  0x13   :  { %p1307_p7 = pnand %p1305_p6, %p1302_p5 }
  0x15   :  { %1310 = shalt.err (!%p1307_p7)
}
  0x16   :  { %s1311_s25 = scalar_lea.vmem %s30_s18, 256  ;;  %p1316_p9 = scmp.lt.s32.totalorder %s30_s18, %s30_s18 }
  0x17   :  { %p1312_p8 = scmp.ne.s32.totalorder %s30_s18, %s1311_s25  ;;  %p1317_p10 = scmp.lt.s32.totalorder %s1311_s25, %s1311_s25 }
  0x19   :  { %p1318_p11 = por %p1317_p10, %p1316_p9 }
  0x1b   :  { %p1319_p12 = pnand %p1318_p11, %p1312_p8 }
  0x1d   :  { %1322 = shalt.err (!%p1319_p12)
}
  0x1e   :  { %s1353_s26 = smov 128   ;;  %s1354_s27 = smov 8  }
  0x1f   :  { %35 = dma.hbm_to_vmem [thread:$0]  %s3069_s2, 256, %s30_s18, [#allocation4], %s1353_s26, %s1353_s26, %s1354_s27  }
  0x20   :  { %1345 = dma.done.wait [#allocation6], 16  }
  0x21   :  { %1346 = vsyncadd [#allocation6], 4294967280 }
  0x22   :  { %1347 = dma.done.wait [#allocation4], 256  }
  0x23   :  { %1348 = vsyncadd [#allocation4], 4294967040 }
  0x24   :  { %42 = sfence }
  0x25   :  { %v43_v0 = vld [vmem:[#allocation7] sm:$0xff]  ;;  %v44_v1 = vld [vmem:[#allocation7 + $0x8] sm:$0xff]  ;;  %vm51_vm0 = vcmask 1043456   ;;  %v1355_v2 = vmov 0.0   ;;  %s1356_s30 = smov 3   ;;  %s1357_s4 = smov 1  }
  0x26   :  { %140 = vrot.lane.b32.xlu1 %v1355_v2, %s1356_s30  ;;  %260 = vrot.lane.b32.xlu0 %v1355_v2, %s1357_s4  ;;  %v52_v3 = vsel %vm51_vm0, %v43_v0, -inf  ;;  %v66_v4 = vsel %vm51_vm0, %v44_v1, -inf  ;;  %v47_v5 = vcombine.high %v43_v0, %v43_v0  ;;  %v48_v8 = vcombine.high %v44_v1, %v44_v1  ;;  %s3071_s2 = smov 2   ;;  %s1359_s5 = smov 127  }
  0x27   :  { %v53_v6 = vrot.slane %v52_v3, 4  ;;  %v67_v7 = vrot.slane %v66_v4, 4  ;;  %vm116_vm1 = vcmask 1041409   ;;  %v80_v30 = vsel %vm51_vm0, %v43_v0, 0.0  ;;  %s1360_s6 = smov 126   ;;  %s1361_s7 = smov 125  }
  0x28   :  { %v59_v9 = vsel %vm51_vm0, %v47_v5, -inf  ;;  %v73_v13 = vsel %vm51_vm0, %v48_v8, -inf  ;;  %v87_v22 = vsel %vm51_vm0, %v47_v5, 0.0  ;;  %v101_v24 = vsel %vm51_vm0, %v48_v8, 0.0  ;;  %s1480_s8 = sld [smem:[#allocation3 + $0x16]]  ;;  %s1482_s9 = sld [smem:[#allocation3 + $0x15]] }
  0x29   :  { %v54_v10 = vmax.f32 %v52_v3, %v53_v6  ;;  %v68_v11 = vmax.f32 %v66_v4, %v67_v7  ;;  %v60_v12 = vrot.slane %v59_v9, 4  ;;  %v74_v14 = vrot.slane %v73_v13, 4  ;;  %s1484_s10 = sld [smem:[#allocation3 + $0x17]]  ;;  %s1486_s11 = sld [smem:[#allocation3 + $0x2]] }
  0x2a   :  { %190 = vrot.lane.b32.xlu1 %v1355_v2, %s3071_s2  ;;  %v88_v29 = vrot.slane %v87_v22, 4  ;;  %v102_v34 = vrot.slane %v101_v24, 4  ;;  %v94_v36 = vsel %vm51_vm0, %v44_v1, 0.0  ;;  %v81_v39 = vrot.slane %v80_v30, 4  ;;  %s1488_s12 = sld [smem:[#allocation3 + $0x9]]  ;;  %s1490_s13 = sld [smem:[#allocation3 + $0x10]] }
  0x2b   :  { %v55_v15 = vrot.slane %v54_v10, 2  ;;  %v69_v16 = vrot.slane %v68_v11, 2  ;;  %v61_v17 = vmax.f32 %v59_v9, %v60_v12  ;;  %v75_v18 = vmax.f32 %v73_v13, %v74_v14  ;;  %s1492_s14 = sld [smem:[#allocation3 + $0x1e]]  ;;  %s1494_s15 = sld [smem:[#allocation3 + $0x25]] }
  0x2c   :  { %v89_v38 = vadd.f32 %v88_v29, %v87_v22  ;;  %v103_v42 = vadd.f32 %v102_v34, %v101_v24  ;;  %v95_v43 = vrot.slane %v94_v36, 4  ;;  %v82_v44 = vadd.f32 %v81_v39, %v80_v30  ;;  %s1496_s16 = sld [smem:[#allocation3 + $0x2c]]  ;;  %s1498_s17 = sld [smem:[#allocation3]] }
  0x2d   :  { %v56_v19 = vmax.f32 %v54_v10, %v55_v15  ;;  %v70_v20 = vmax.f32 %v68_v11, %v69_v16  ;;  %v62_v21 = vrot.slane %v61_v17, 2  ;;  %v76_v23 = vrot.slane %v75_v18, 2  ;;  %s1500_s18 = sld [smem:[#allocation3 + $0x7]]  ;;  %s1502_s19 = sld [smem:[#allocation3 + $0xe]] }
  0x2e   :  { %v90_v46 = vrot.slane %v89_v38, 2  ;;  %v104_v47 = vrot.slane %v103_v42, 2  ;;  %v96_v48 = vadd.f32 %v95_v43, %v94_v36  ;;  %v83_v51 = vrot.slane %v82_v44, 2  ;;  %3181 = sst [smem:[#allocation14_spill]] %s1480_s8  ;;  %s1504_s20 = sld [smem:[#allocation3 + $0x1c]] }
  0x2f   :  { %v57_v25 = vrot.slane %v56_v19, 1  ;;  %v71_v26 = vrot.slane %v70_v20, 1  ;;  %v63_v27 = vmax.f32 %v61_v17, %v62_v21  ;;  %v77_v28 = vmax.f32 %v75_v18, %v76_v23  ;;  %3182 = sst [smem:[#allocation15_spill]] %s1482_s9  ;;  %s1506_s21 = sld [smem:[#allocation3 + $0x23]] }
  0x30   :  { %v91_v49 = vadd.f32 %v90_v46, %v89_v38  ;;  %v105_v50 = vadd.f32 %v104_v47, %v103_v42  ;;  %v97_v52 = vrot.slane %v96_v48, 2  ;;  %v84_v55 = vadd.f32 %v83_v51, %v82_v44  ;;  %3183 = sst [smem:[#allocation16_spill]] %s1484_s10  ;;  %s1510_s23 = sld [smem:[#allocation3 + $0x1]] }
  0x31   :  { %v58_v31 = vmax.f32 %v56_v19, %v57_v25  ;;  %v72_v32 = vmax.f32 %v70_v20, %v71_v26  ;;  %v64_v33 = vrot.slane %v63_v27, 1  ;;  %v78_v35 = vrot.slane %v77_v28, 1  ;;  %s1508_s22 = sld [smem:[#allocation3 + $0x2a]]  ;;  %s1512_s0 = sld [smem:[#allocation3 + $0x8]] }
  0x32   :  { %v92_v53 = vrot.slane %v91_v49, 1  ;;  %v106_v54 = vrot.slane %v105_v50, 1  ;;  %v98_v56 = vadd.f32 %v97_v52, %v96_v48  ;;  %v85_v59 = vrot.slane %v84_v55, 1  ;;  %s1514_s24 = sld [smem:[#allocation3 + $0xf]]  ;;  %s1516_s25 = sld [smem:[#allocation3 + $0x1d]] }
  0x33   :  { %v1420_v37 = vsel %vm116_vm1, %v72_v32, %v58_v31  ;;  %v65_v40 = vmax.f32 %v63_v27, %v64_v33  ;;  %v79_v41 = vmax.f32 %v77_v28, %v78_v35  ;;  %s1518_s26 = sld [smem:[#allocation3 + $0x24]]  ;;  %s1520_s27 = sld [smem:[#allocation3 + $0x2b]]  ;;  %v1584_v13 = vstv %s1486_s11 }
  0x34   :  { %186 = vrot.lane.b32.xlu1 %v1420_v37, %s3071_s2  ;;  %136 = vrot.lane.b32.xlu0 %v1420_v37, %s1356_s30  ;;  %v93_v57 = vadd.f32 %v92_v53, %v91_v49  ;;  %v107_v58 = vadd.f32 %v106_v54, %v105_v50  ;;  %v99_v60 = vrot.slane %v98_v56, 1  ;;  %v86_v63 = vadd.f32 %v85_v59, %v84_v55  ;;  %s1522_s28 = sld [smem:[#allocation3 + $0x3]]  ;;  %s1524_s29 = sld [smem:[#allocation3 + $0xa]] }
  0x35   :  { %v1431_v45 = vsel %vm116_vm1, %v79_v41, %v65_v40  ;;  %s1538_s3 = sld [smem:[#allocation3 + $0xb]]  ;;  %s1540_s1 = sld [smem:[#allocation3 + $0x12]]  ;;  %v1587_v14 = vstv %s1488_s12  ;;  %v1598_v17 = vstv %s1490_s13  ;;  %v1601_v18 = vstv %s1492_s14 }
  0x36   :  { %v109_v61 = vmul.f32 0.25, %v93_v57  ;;  %v111_v62 = vmul.f32 0.25, %v107_v58  ;;  %v100_v0 = vadd.f32 %v99_v60, %v98_v56  ;;  %v108_v3 = vmul.f32 0.25, %v86_v63  ;;  %s1603_s11 = sld [smem:[#allocation3 + $0x31]]  ;;  %s1605_s12 = sld [smem:[#allocation3 + $0x38]] }
  0x37   :  { %3184 = sst [smem:[#allocation17_spill]] %s1512_s0  ;;  %s1550_s0 = sld [smem:[#allocation3 + $0x5]]  ;;  %v1608_v19 = vstv %s1494_s15  ;;  %v1611_v20 = vstv %s1496_s16  ;;  %v1614_v21 = vstv %s1498_s17  ;;  %v1617_v22 = vstv %s1500_s18 }
  0x38   :  { %380 = vrot.lane.b32.xlu1 %v1420_v37, %s1359_s5  ;;  %256 = vrot.lane.b32.xlu0 %v1420_v37, %s1357_s4  ;;  %v1452_v1 = vsel %vm116_vm1, %v111_v62, %v109_v61  ;;  %v110_v4 = vmul.f32 0.25, %v100_v0  ;;  %3185 = sst [smem:[#allocation18_spill]] %s1514_s24  ;;  %s1548_s24 = sld [smem:[#allocation3 + $0x19]]  ;;  %v1624_v23 = vstv %s1502_s19  ;;  %v1627_v24 = vstv %s1504_s20 }
  0x39   :  { %3179 = vst [vmem:[#allocation12_spill] sm:$0xff] %v1452_v1  ;;  %3186 = sst [smem:[#allocation19_spill]] %s1516_s25  ;;  %s1546_s25 = sld [smem:[#allocation3 + $0x2e]]  ;;  %v1630_v25 = vstv %s1506_s21  ;;  %v1633_v26 = vstv %s1508_s22  ;;  %v1640_v27 = vstv %s1510_s23 }
  0x3a   :  { %v1458_v5 = vsel %vm116_vm1, %v110_v4, %v108_v3  ;;  %3187 = sst [smem:[#allocation20_spill]] %s1518_s26  ;;  %s1544_s26 = sld [smem:[#allocation3 + $0x27]]  ;;  %v1643_v28 = vstv %s1522_s28  ;;  %v1646_v29 = vstv %s1524_s29 }
  0x3b   :  { %3180 = vst [vmem:[#allocation13_spill] sm:$0xff] %v1458_v5  ;;  %3188 = sst [smem:[#allocation21_spill]] %s1520_s27  ;;  %s1542_s27 = sld [smem:[#allocation3 + $0x20]]  ;;  %v1690_v41 = vmul.f32 %v1643_v28, %v1420_v37  ;;  %v1694_v42 = vmul.f32 %v1646_v29, %v1420_v37  ;;  %v1725_v49 = vmul.f32 %v1643_v28, %v1431_v45  ;;  %v1729_v50 = vmul.f32 %v1646_v29, %v1431_v45 }
  0x3c   :  { %258 = vrot.lane.b32.xlu1 %v1431_v45, %s1357_s4  ;;  %138 = vrot.lane.b32.xlu0 %v1431_v45, %s1356_s30  ;;  %3190 = sst [smem:[#allocation23_spill]] %s1540_s1  ;;  %s1557_s1 = sld [smem:[#allocation3 + $0x13]]  ;;  %v1762_v56 = vstv %s1538_s3  ;;  %v1822_v0 = vstv %s1603_s11 }
  0x3d   :  { %3195 = sst [smem:[#allocation28_spill]] %s1550_s0  ;;  %s1565_s0 = sld [smem:[#allocation3 + $0x28]]  ;;  %3224 = vst [vmem:[#allocation40_spill] sm:$0xff] %v1725_v49  ;;  %3225 = vst [vmem:[#allocation41_spill] sm:$0xff] %v1729_v50 }
  0x3e   :  { %3194 = sst [smem:[#allocation27_spill]] %s1548_s24  ;;  %s1569_s24 = sld [smem:[#allocation3 + $0x6]]  ;;  %3240 = vst [vmem:[#allocation48_spill] sm:$0xff] %v1762_v56  ;;  %3256 = vst [vmem:[#allocation62_spill] sm:$0xff] %v1822_v0 }
  0x3f   :  { %3193 = sst [smem:[#allocation26_spill]] %s1546_s25  ;;  %s1567_s25 = sld [smem:[#allocation3 + $0x2f]] }
  0x40   :  { %384 = vrot.lane.b32.xlu1 %v1355_v2, %s1359_s5  ;;  %188 = vrot.lane.b32.xlu0 %v1431_v45, %s3071_s2  ;;  %3192 = sst [smem:[#allocation25_spill]] %s1544_s26  ;;  %s1561_s26 = sld [smem:[#allocation3 + $0x21]] }
  0x41   :  { %3191 = sst [smem:[#allocation24_spill]] %s1542_s27  ;;  %s1619_s13 = sld [smem:[#allocation3 + $0x3f]] }
  0x42   :  { %s1559_s27 = sld [smem:[#allocation3 + $0x1a]]  ;;  %s1621_s14 = sld [smem:[#allocation3 + $0x4d]]  ;;  %v1792_v63 = vstv %s1557_s1 }
  0x43   :  { %s3202_s15 = sld [smem:[#allocation17_spill]]  ;;  %s3203_s16 = sld [smem:[#allocation18_spill]]  ;;  %3249 = vst [vmem:[#allocation55_spill] sm:$0xff] %v1792_v63  ;;  %v1799_v4 = vstv %s1565_s0 }
  0x44   :  { %452 = vrot.lane.b32.xlu1 %v1431_v45, %s1360_s6  ;;  %382 = vrot.lane.b32.xlu0 %v1431_v45, %s1359_s5  ;;  %3200 = sst [smem:[#allocation33_spill]] %s1569_s24  ;;  %s1591_s24 = sld [smem:[#allocation3 + $0x30]]  ;;  %3251 = vst [vmem:[#allocation57_spill] sm:$0xff] %v1799_v4 }
  0x45   :  { %s1635_s17 = sld [smem:[#allocation3 + $0x54]]  ;;  %s3204_s18 = sld [smem:[#allocation19_spill]] }
  0x46   :  { %3199 = sst [smem:[#allocation32_spill]] %s1561_s26  ;;  %s1577_s26 = sld [smem:[#allocation3 + $0x14]] }
  0x47   :  { %s1637_s10 = sld [smem:[#allocation3 + $0x5b]]  ;;  %s3205_s9 = sld [smem:[#allocation20_spill]] }
  0x48   :  { %520 = vrot.lane.b32.xlu1 %v1420_v37, %s1361_s7  ;;  %450 = vrot.lane.b32.xlu0 %v1420_v37, %s1360_s6  ;;  %3198 = sst [smem:[#allocation31_spill]] %s1559_s27  ;;  %s1579_s27 = sld [smem:[#allocation3 + $0x22]] }
  0x49   :  { %s3206_s19 = sld [smem:[#allocation21_spill]]  ;;  %s1651_s20 = sld [smem:[#allocation3 + $0x1b]]  ;;  %v1670_v35 = vstv %s3202_s15  ;;  %v1673_v36 = vstv %s3203_s16 }
  0x4a   :  { %s1653_s21 = sld [smem:[#allocation3 + $0x32]]  ;;  %s1665_s22 = sld [smem:[#allocation3 + $0x39]]  ;;  %v1831_v11 = vstv %s1591_s24 }
  0x4b   :  { %s1667_s23 = sld [smem:[#allocation3 + $0x40]]  ;;  %v1676_v38 = vstv %s3204_s18  ;;  %s1681_s28 = sld [smem:[#allocation3 + $0x4e]]  ;;  %3260 = vst [vmem:[#allocation65_spill] sm:$0xff] %v1831_v11 }
  0x4c   :  { %524 = vrot.lane.b32.xlu1 %v1355_v2, %s1361_s7  ;;  %454 = vrot.lane.b32.xlu0 %v1355_v2, %s1360_s6  ;;  %v3082_v2 = vlaneseq  ;;  %s1683_s29 = sld [smem:[#allocation3 + $0x55]]  ;;  %s1721_s15 = sld [smem:[#allocation3 + $0x3a]] }
  0x4d   :  { %v1679_v39 = vstv %s3205_s9  ;;  %s1700_s9 = sld [smem:[#allocation3 + $0x5c]]  ;;  %s3223_s16 = sld [smem:[#allocation25_spill]]  ;;  %v1856_v11 = vstv %s1637_s10 }
  0x4e   :  { %v1553_v6 = vand.u32 127, %v3082_v2  ;;  %s3227_s18 = sld [smem:[#allocation27_spill]]  ;;  %s1738_s8 = sld [smem:[#allocation3 + $0x41]]  ;;  %v1815_v2 = vstv %s1577_s26  ;;  %3270 = vst [vmem:[#allocation71_spill] sm:$0xff] %v1856_v11 }
  0x4f   :  { %v1686_v40 = vstv %s3206_s19  ;;  %s3229_s19 = sld [smem:[#allocation26_spill]]  ;;  %s1787_s3 = sld [smem:[#allocation3 + $0x3b]]  ;;  %3255 = vst [vmem:[#allocation61_spill] sm:$0xff] %v1815_v2  ;;  %v1840_v2 = vstv %s1605_s12 }
  0x50   :  { %592 = vrot.lane.b32.xlu1 %v1452_v1, %s1356_s30  ;;  %522 = vrot.lane.b32.xlu0 %v1431_v45, %s1361_s7  ;;  %3196 = vst [vmem:[#allocation29_spill] sm:$0xff] %v1553_v6  ;;  %v131_v7 = vadd.s32 128, %v1553_v6  ;;  %v132_v8 = vadd.s32 256, %v1553_v6  ;;  %v1574_v9 = vand.u32 15, %v1553_v6  ;;  %3207 = sst [smem:[#allocation17_spill]] %s1665_s22  ;;  %s1775_s22 = sld [smem:[#allocation3 + $0x48]]  ;;  %v1860_v0 = vstv %s1653_s21 }
  0x51   :  { %3208 = sst [smem:[#allocation18_spill]] %s1667_s23  ;;  %s1817_s1 = sld [smem:[#allocation3 + $0x50]]  ;;  %3264 = vst [vmem:[#allocation67_spill] sm:$0xff] %v1840_v2  ;;  %3273 = vst [vmem:[#allocation72_spill] sm:$0xff] %v1860_v0  ;;  %vm192_vm2 = vcmp.lt.s32.totalorder %v1553_v6, 2  ;;  %vm142_vm3 = vcmp.lt.s32.totalorder %v1553_v6, 3 }
  0x52   :  { %v1593_v15 = vand.u32 15, %v131_v7  ;;  %v1595_v16 = vand.u32 15, %v132_v8  ;;  %3209 = sst [smem:[#allocation19_spill]] %s1681_s28  ;;  %s1773_s28 = sld [smem:[#allocation3 + $0x47]]  ;;  %v1806_v7 = vstv %s1567_s25  ;;  %vm196_vm4 = vcmp.ge.s32.totalorder %v1574_v9, 2 }
  0x53   :  { %3210 = sst [smem:[#allocation20_spill]] %s1683_s29  ;;  %s1759_s29 = sld [smem:[#allocation3 + $0x5d]]  ;;  %v1771_v59 = vstv %s3223_s16  ;;  %3252 = vst [vmem:[#allocation58_spill] sm:$0xff] %v1806_v7  ;;  %vm146_vm5 = vcmp.ge.s32.totalorder %v1574_v9, 3  ;;  %vm262_vm6 = vcmp.lt.s32.totalorder %v1553_v6, 1  ;;  %vm3158_vm7 = vcmp.ge.s32.totalorder %v1574_v9, 1 }
  0x54   :  { %656 = vrot.lane.b32.xlu1 %v1452_v1, %s3071_s2  ;;  %590 = vrot.lane.b32.xlu0 %v1458_v5, %s1356_s30  ;;  %s1526_s30 = sld [smem:[#allocation3 + $0x11]]  ;;  %3213 = sst [smem:[#allocation21_spill]] %s1700_s9  ;;  %3243 = vst [vmem:[#allocation51_spill] sm:$0xff] %v1771_v59  ;;  %vm3156_vm8 = vcmp.ge.s32.totalorder %v1593_v15, 1  ;;  %vm268_vm9 = vcmp.ge.s32.totalorder %v1595_v16, 1  ;;  %vm148_vm10 = vcmp.ge.s32.totalorder %v1595_v16, 3 }
  0x55   :  { %3230 = sst [smem:[#allocation25_spill]] %s1738_s8  ;;  %s3238_s8 = sld [smem:[#allocation31_spill]]  ;;  %v1779_v60 = vstv %s3229_s19  ;;  %vm147_vm11 = vcmp.ge.s32.totalorder %v1593_v15, 3  ;;  %vm197_vm12 = vcmp.ge.s32.totalorder %v1593_v15, 2  ;;  %vm198_vm13 = vcmp.ge.s32.totalorder %v1595_v16, 2 }
  0x56   :  { %s1757_s9 = sld [smem:[#allocation3 + $0x56]]  ;;  %3246 = vst [vmem:[#allocation52_spill] sm:$0xff] %v1779_v60  ;;  %s1819_s0 = sld [smem:[#allocation3 + $0x42]]  ;;  %vm3157_vm14 = vcmp.lt.s32.totalorder %v1574_v9, 15  ;;  %vm391_vm15 = vcmp.lt.s32.totalorder %v1593_v15, 15  ;;  %vm3159_vm0 = vcmp.lt.s32.totalorder %v1553_v6, 126 }
  0x57   :  { %s1833_s25 = sld [smem:[#allocation3 + $0x3e]]  ;;  %s1835_s26 = sld [smem:[#allocation3 + $0x35]]  ;;  %vm386_vm1 = vcmp.lt.s32.totalorder %v1553_v6, 127 }
  0x58   :  { %720 = vrot.lane.b32.xlu1 %v1452_v1, %s1357_s4  ;;  %654 = vrot.lane.b32.xlu0 %v1458_v5, %s3071_s2  ;;  %s1536_s2 = sld [smem:[#allocation3 + $0x4]]  ;;  %s3265_s16 = sld [smem:[#allocation20_spill]] }
  0x59   :  { %s3267_s11 = sld [smem:[#allocation21_spill]]  ;;  %s1853_s24 = sld [smem:[#allocation3 + $0x43]] }
  0x5a   :  { %v1649_v30 = vstv %s1526_s30  ;;  %s1883_s10 = sld [smem:[#allocation3 + $0x36]]  ;;  %s1885_s21 = sld [smem:[#allocation3 + $0x57]] }
  0x5b   :  { %v1698_v43 = vmul.f32 %v1649_v30, %v1420_v37  ;;  %v1733_v51 = vmul.f32 %v1649_v30, %v1431_v45 }
  0x5c   :  { %838 = vrot.lane.b32.xlu1 %v1452_v1, %s1359_s5  ;;  %718 = vrot.lane.b32.xlu0 %v1458_v5, %s1357_s4  ;;  %s1528_s4 = sld [smem:[#allocation3 + $0x18]] }
  0x5d   :  { %3212 = vst [vmem:[#allocation35_spill] sm:$0xff] %v1698_v43  ;;  %3226 = vst [vmem:[#allocation42_spill] sm:$0xff] %v1733_v51 }
  0x5e   :  { %3189 = sst [smem:[#allocation22_spill]] %s1536_s2  ;;  %s1555_s2 = sld [smem:[#allocation3 + $0xc]] }
  0x5f   :  { %s3211_s30 = sld [smem:[#allocation22_spill]]  ;;  %v1881_v0 = vstv %s3267_s11 }
  0x60   :  { %902 = vrot.lane.b32.xlu1 %v1452_v1, %s1360_s6  ;;  %836 = vrot.lane.b32.xlu0 %v1458_v5, %s1359_s5  ;;  %s1530_s5 = sld [smem:[#allocation3 + $0x1f]]  ;;  %3281 = vst [vmem:[#allocation77_spill] sm:$0xff] %v1881_v0  ;;  %s1931_s11 = sld [smem:[#allocation3 + $0x60]] }
  0x62   :  { %v351_v31 = vstv %s1528_s4  ;;  %s1702_s4 = sld [smem:[#allocation3 + $0x46]] }
  0x63   :  { %v1705_v44 = vmul.f32 %v351_v31, %v1420_v37 }
  0x64   :  { %966 = vrot.lane.b32.xlu1 %v1452_v1, %s1361_s7  ;;  %900 = vrot.lane.b32.xlu0 %v1458_v5, %s1360_s6  ;;  %s1532_s6 = sld [smem:[#allocation3 + $0x26]]  ;;  %3197 = sst [smem:[#allocation30_spill]] %s1555_s2 }
  0x65   :  { %s1571_s2 = sld [smem:[#allocation3 + $0xd]]  ;;  %3215 = vst [vmem:[#allocation36_spill] sm:$0xff] %v1705_v44  ;;  %v1743_v52 = vstv %s3211_s30  ;;  %s3244_s30 = sld [smem:[#allocation33_spill]] }
  0x66   :  { %v1657_v32 = vstv %s1530_s5  ;;  %s3219_s5 = sld [smem:[#allocation23_spill]]  ;;  %3234 = vst [vmem:[#allocation44_spill] sm:$0xff] %v1743_v52 }
  0x67   :  { %v1709_v46 = vmul.f32 %v1657_v32, %v1420_v37  ;;  %v1747_v53 = vmul.f32 %v1657_v32, %v1431_v45 }
  0x68   :  { %964 = vrot.lane.b32.xlu0 %v1458_v5, %s1361_s7  ;;  %s1534_s7 = sld [smem:[#allocation3 + $0x2d]]  ;;  %3214 = sst [smem:[#allocation22_spill]] %s1702_s4 }
  0x69   :  { %3216 = vst [vmem:[#allocation37_spill] sm:$0xff] %v1709_v46  ;;  %s3233_s4 = sld [smem:[#allocation30_spill]]  ;;  %3235 = vst [vmem:[#allocation45_spill] sm:$0xff] %v1747_v53 }
  0x6a   :  { %v1660_v33 = vstv %s1532_s6  ;;  %s1719_s6 = sld [smem:[#allocation3 + $0x33]] }
  0x6b   :  { %3201 = sst [smem:[#allocation34_spill]] %s1571_s2  ;;  %s1589_s2 = sld [smem:[#allocation3 + $0x29]]  ;;  %v1713_v47 = vmul.f32 %v1660_v33, %v1420_v37  ;;  %v1751_v54 = vmul.f32 %v1660_v33, %v1431_v45  ;;  %v1809_v8 = vstv %s3244_s30 }
  0x6c   :  { %v1765_v57 = vstv %s3219_s5  ;;  %s3245_s23 = sld [smem:[#allocation34_spill]]  ;;  %s1789_s5 = sld [smem:[#allocation3 + $0x3c]]  ;;  %3253 = vst [vmem:[#allocation59_spill] sm:$0xff] %v1809_v8  ;;  %v1846_v8 = vstv %s1621_s14 }
  0x6d   :  { %3217 = vst [vmem:[#allocation38_spill] sm:$0xff] %v1713_v47  ;;  %3236 = vst [vmem:[#allocation46_spill] sm:$0xff] %v1751_v54  ;;  %s1865_s30 = sld [smem:[#allocation3 + $0x5e]]  ;;  %s1867_s14 = sld [smem:[#allocation3 + $0x5f]] }
  0x6e   :  { %v1663_v34 = vstv %s1534_s7  ;;  %s3221_s7 = sld [smem:[#allocation24_spill]]  ;;  %3241 = vst [vmem:[#allocation49_spill] sm:$0xff] %v1765_v57  ;;  %3268 = vst [vmem:[#allocation69_spill] sm:$0xff] %v1846_v8 }
  0x6f   :  { %v1717_v48 = vmul.f32 %v1663_v34, %v1420_v37  ;;  %3222 = sst [smem:[#allocation24_spill]] %s1721_s15  ;;  %v1736_v37 = vmul.f32 %v351_v31, %v1431_v45  ;;  %s3231_s15 = sld [smem:[#allocation28_spill]]  ;;  %v1755_v55 = vmul.f32 %v1663_v34, %v1431_v45  ;;  %v1785_v62 = vstv %s3233_s4 }
  0x70   :  { %3220 = sst [smem:[#allocation23_spill]] %s1719_s6  ;;  %s1740_s6 = sld [smem:[#allocation3 + $0x4f]]  ;;  %3248 = vst [vmem:[#allocation54_spill] sm:$0xff] %v1785_v62  ;;  %v1825_v45 = vstv %s1579_s27 }
  0x71   :  { %3218 = vst [vmem:[#allocation39_spill] sm:$0xff] %v1717_v48  ;;  %3228 = vst [vmem:[#allocation43_spill] sm:$0xff] %v1736_v37  ;;  %s1803_s4 = sld [smem:[#allocation3 + $0x34]]  ;;  %v1828_v12 = vstv %s1589_s2  ;;  %s1851_s2 = sld [smem:[#allocation3 + $0x51]] }
  0x72   :  { %3237 = vst [vmem:[#allocation47_spill] sm:$0xff] %v1755_v55  ;;  %v1812_v31 = vstv %s3245_s23  ;;  %3258 = vst [vmem:[#allocation63_spill] sm:$0xff] %v1825_v45  ;;  %s3261_s23 = sld [smem:[#allocation18_spill]]  ;;  %v1849_v45 = vstv %s1635_s17  ;;  %s3271_s27 = sld [smem:[#allocation22_spill]] }
  0x73   :  { %3254 = vst [vmem:[#allocation60_spill] sm:$0xff] %v1812_v31  ;;  %3259 = vst [vmem:[#allocation64_spill] sm:$0xff] %v1828_v12  ;;  %v1843_v31 = vstv %s1619_s13  ;;  %s3272_s19 = sld [smem:[#allocation23_spill]]  ;;  %s3274_s12 = sld [smem:[#allocation24_spill]] }
  0x74   :  { %v1768_v58 = vstv %s3221_s7  ;;  %s1801_s7 = sld [smem:[#allocation3 + $0x3d]]  ;;  %3266 = vst [vmem:[#allocation68_spill] sm:$0xff] %v1843_v31  ;;  %3269 = vst [vmem:[#allocation70_spill] sm:$0xff] %v1849_v45  ;;  %s3276_s13 = sld [smem:[#allocation25_spill]]  ;;  %v1878_v45 = vstv %s3265_s16  ;;  %v1910_v31 = vmul.f32 0.0, %v1643_v28 }
  0x75   :  { %3242 = vst [vmem:[#allocation50_spill] sm:$0xff] %v1768_v58  ;;  %v1782_v61 = vstv %s3231_s15  ;;  %s3263_s15 = sld [smem:[#allocation19_spill]]  ;;  %3280 = vst [vmem:[#allocation76_spill] sm:$0xff] %v1878_v45  ;;  %v1907_v45 = vstv %s1757_s9  ;;  %s1917_s16 = sld [smem:[#allocation3 + $0x44]] }
  0x76   :  { %3232 = sst [smem:[#allocation27_spill]] %s1740_s6  ;;  %s3239_s6 = sld [smem:[#allocation32_spill]]  ;;  %3247 = vst [vmem:[#allocation53_spill] sm:$0xff] %v1782_v61  ;;  %3286 = vst [vmem:[#allocation82_spill] sm:$0xff] %v1907_v45  ;;  %v1927_v45 = vmul.f32 0.0, %v1657_v32  ;;  %v1943_v32 = vmul.f32 0.0, %v1663_v34 }
  0x77   :  { %s3277_s17 = sld [smem:[#allocation27_spill]]  ;;  %3287 = vst [vmem:[#allocation83_spill] sm:$0xff] %v1910_v31  ;;  %v783_v34 = vstv %s1803_s4  ;;  %v1983_v31 = vstv %s1851_s2  ;;  %s3327_s4 = sld [smem:[#allocation16_spill]] }
  0x78   :  { %v1872_v11 = vstv %s3261_s23  ;;  %s1901_s23 = sld [smem:[#allocation3 + $0x52]]  ;;  %3291 = vst [vmem:[#allocation87_spill] sm:$0xff] %v1927_v45  ;;  %s1929_s9 = sld [smem:[#allocation3 + $0x45]]  ;;  %3295 = vst [vmem:[#allocation91_spill] sm:$0xff] %v1943_v32  ;;  %v791_v45 = vstv %s1787_s3  ;;  %v1966_v32 = vstv %s1833_s25 }
  0x79   :  { %3278 = vst [vmem:[#allocation74_spill] sm:$0xff] %v1872_v11  ;;  %v1891_v8 = vstv %s3272_s19  ;;  %v1894_v11 = vstv %s3274_s12  ;;  %s1948_s19 = sld [smem:[#allocation3 + $0x58]]  ;;  %s1961_s12 = sld [smem:[#allocation3 + $0x59]]  ;;  %3299 = vst [vmem:[#allocation95_spill] sm:$0xff] %v1966_v32 }
  0x7a   :  { %3282 = vst [vmem:[#allocation78_spill] sm:$0xff] %v1891_v8  ;;  %3283 = vst [vmem:[#allocation79_spill] sm:$0xff] %v1894_v11  ;;  %v1924_v8 = vmul.f32 0.0, %v1649_v30  ;;  %v1940_v30 = vmul.f32 0.0, %v1660_v33  ;;  %v1952_v11 = vmul.f32 %v791_v45, %v1458_v5  ;;  %v1958_v33 = vstv %s1801_s7  ;;  %s1963_s3 = sld [smem:[#allocation3 + $0x5a]]  ;;  %s3315_s7 = sld [smem:[#allocation15_spill]] }
  0x7b   :  { %v1875_v12 = vstv %s3263_s15  ;;  %s1915_s15 = sld [smem:[#allocation3 + $0x53]]  ;;  %3298 = vst [vmem:[#allocation94_spill] sm:$0xff] %v1958_v33  ;;  %3304 = vst [vmem:[#allocation100_spill] sm:$0xff] %v1983_v31  ;;  %s1367_s25 = smov 96  }
  0x7c   :  { %v1796_v3 = vstv %s3239_s6  ;;  %s3257_s6 = sld [smem:[#allocation17_spill]]  ;;  %3279 = vst [vmem:[#allocation75_spill] sm:$0xff] %v1875_v12  ;;  %v1897_v12 = vstv %s3276_s13  ;;  %3290 = vst [vmem:[#allocation86_spill] sm:$0xff] %v1924_v8  ;;  %v1955_v8 = vstv %s1789_s5  ;;  %s3314_s5 = sld [smem:[#allocation14_spill]] }
  0x7d   :  { %3250 = vst [vmem:[#allocation56_spill] sm:$0xff] %v1796_v3  ;;  %3284 = vst [vmem:[#allocation80_spill] sm:$0xff] %v1897_v12  ;;  %v1904_v0 = vstv %s3277_s17  ;;  %v1920_v12 = vstv %s1759_s29  ;;  %s1946_s29 = sld [smem:[#allocation3 + $0x61]]  ;;  %v3338_v48 = vstv %s3327_s4  ;;  %s2973_s2 = sld [smem:[#allocation3 + $0x4a]] }
  0x7e   :  { %3285 = vst [vmem:[#allocation81_spill] sm:$0xff] %v1904_v0  ;;  %3289 = vst [vmem:[#allocation85_spill] sm:$0xff] %v1920_v12  ;;  %v1986_v12 = vstv %s1865_s30  ;;  %v2019_v31 = vstv %s1901_s23  ;;  %s3611_s13 = sld [smem:[#allocation147_spill]]  ;;  %s1369_s30 = smov [#allocation8]  }
  0x7f   :  { %3294 = vst [vmem:[#allocation90_spill] sm:$0xff] %v1940_v30  ;;  %3296 = vst [vmem:[#allocation92_spill] sm:$0xff] %v1952_v11  ;;  %v1969_v30 = vmul.f32 %v783_v34, %v1458_v5  ;;  %v799_v11 = vstv %s1819_s0  ;;  %v1996_v0 = vmul.f32 %v1986_v12, %v1458_v5  ;;  %s1366_s0 = smov 80  }
  0x80   :  { %3297 = vst [vmem:[#allocation93_spill] sm:$0xff] %v1955_v8  ;;  %v1976_v8 = vstv %s1835_s26  ;;  %3305 = vst [vmem:[#allocation101_spill] sm:$0xff] %v1986_v12  ;;  %v1989_v32 = vmul.f32 %v799_v11, %v1458_v5  ;;  %v3325_v63 = vstv %s3315_s7  ;;  %v2084_v60 = vmul.f32 %v799_v11, %v1452_v1  ;;  %s2971_s26 = sld [smem:[#allocation3 + $0x49]] }
  0x81   :  { %3300 = vst [vmem:[#allocation96_spill] sm:$0xff] %v1969_v30  ;;  %3302 = vst [vmem:[#allocation98_spill] sm:$0xff] %v1976_v8  ;;  %v1992_v30 = vstv %s1853_s24  ;;  %v1999_v8 = vstv %s1885_s21  ;;  %v2022_v7 = vstv %s1915_s15  ;;  %s2983_s24 = sld [smem:[#allocation3 + $0x4b]] }
  0x82   :  { %v1863_v2 = vstv %s3257_s6  ;;  %s1899_s6 = sld [smem:[#allocation3 + $0x37]]  ;;  %3306 = vst [vmem:[#allocation102_spill] sm:$0xff] %v1989_v32  ;;  %3307 = vst [vmem:[#allocation103_spill] sm:$0xff] %v1992_v30  ;;  %v2010_v32 = vstv %s1867_s14  ;;  %v2014_v12 = vmul.f32 %v1999_v8, %v1458_v5  ;;  %v3324_v4 = vstv %s3314_s5  ;;  %s1148_s14 = sshll.u32 %s1369_s30, 4  ;;  %s1149_s14 = int_to_ptr.vmem [resolvable:$true] %s1148_s14 }
  0x83   :  { %3275 = vst [vmem:[#allocation73_spill] sm:$0xff] %v1863_v2  ;;  %v1913_v2 = vmul.f32 0.0, %v1646_v29  ;;  %3308 = vst [vmem:[#allocation104_spill] sm:$0xff] %v1996_v0  ;;  %s1323_s17 = scalar_lea.vmem %s1149_s14, 64  ;;  %p1328_p0 = scmp.lt.s32.totalorder %s1149_s14, %s1149_s14 }
  0x84   :  { %3309 = vst [vmem:[#allocation105_spill] sm:$0xff] %v1999_v8  ;;  %3312 = vst [vmem:[#allocation108_spill] sm:$0xff] %v2010_v32  ;;  %v2041_v32 = vstv %s1931_s11  ;;  %p1324_p13 = scmp.ne.s32.totalorder %s1149_s14, %s1323_s17  ;;  %p1329_p1 = scmp.lt.s32.totalorder %s1323_s17, %s1323_s17 }
  0x85   :  { %3288 = vst [vmem:[#allocation84_spill] sm:$0xff] %v1913_v2  ;;  %v1972_v2 = vstv %s1817_s1  ;;  %3313 = vst [vmem:[#allocation109_spill] sm:$0xff] %v2014_v12  ;;  %v2038_v12 = vstv %s1929_s9  ;;  %s1365_s1 = smov 16  }
  0x86   :  { %3301 = vst [vmem:[#allocation97_spill] sm:$0xff] %v1972_v2  ;;  %v1980_v33 = vmul.f32 %v1972_v2, %v1458_v5  ;;  %v2004_v2 = vstv %s1883_s10  ;;  %3316 = vst [vmem:[#allocation110_spill] sm:$0xff] %v2019_v31  ;;  %v2053_v31 = vstv %s1948_s19  ;;  %p1330_p2 = por %p1329_p1, %p1328_p0 }
  0x87   :  { %3310 = vst [vmem:[#allocation106_spill] sm:$0xff] %v2004_v2  ;;  %3317 = vst [vmem:[#allocation111_spill] sm:$0xff] %v2022_v7  ;;  %v2027_v2 = vmul.f32 0.0, %v783_v34  ;;  %v2050_v7 = vstv %s1946_s29 }
  0x88   :  { %3303 = vst [vmem:[#allocation99_spill] sm:$0xff] %v1980_v33  ;;  %v2007_v33 = vstv %s1899_s6  ;;  %3320 = vst [vmem:[#allocation114_spill] sm:$0xff] %v2038_v12  ;;  %v2062_v12 = vstv %s1961_s12  ;;  %p1331_p3 = pnand %p1330_p2, %p1324_p13 }
  0x89   :  { %3311 = vst [vmem:[#allocation107_spill] sm:$0xff] %v2007_v33  ;;  %v2025_v33 = vstv %s1917_s16  ;;  %3319 = vst [vmem:[#allocation113_spill] sm:$0xff] %v2027_v2 }
  0x8a   :  { %3318 = vst [vmem:[#allocation112_spill] sm:$0xff] %v2025_v33  ;;  %3321 = vst [vmem:[#allocation115_spill] sm:$0xff] %v2041_v32  ;;  %v2065_v32 = vstv %s1963_s3 }
  0x8b   :  { %3322 = vst [vmem:[#allocation116_spill] sm:$0xff] %v2050_v7  ;;  %3323 = vst [vmem:[#allocation117_spill] sm:$0xff] %v2053_v31  ;;  %v2073_v7 = vmul.f32 %v791_v45, %v1452_v1  ;;  %v2075_v31 = vmul.f32 0.0, %v791_v45 }
  0x8c   :  { %3326 = vst [vmem:[#allocation118_spill] sm:$0xff] %v2062_v12  ;;  %3328 = vst [vmem:[#allocation119_spill] sm:$0xff] %v2065_v32 }
  0x8d   :  { %3331 = vst [vmem:[#allocation122_spill] sm:$0xff] %v2073_v7  ;;  %3332 = vst [vmem:[#allocation123_spill] sm:$0xff] %v2075_v31 }
  0x8e   :  { %3334 = vst [vmem:[#allocation125_spill] sm:$0xff] %v2084_v60 }
  0x98   :  { %v1837_v10 = vpop.permute.xlu1 %140  ;;  %v1933_v28 = vpop.permute.xlu0 %260 }
  0x99   :  { %3262 = vst [vmem:[#allocation66_spill] sm:$0xff] %v1837_v10  ;;  %3292 = vst [vmem:[#allocation88_spill] sm:$0xff] %v1933_v28 }
  0x9c   :  { %v1935_v29 = vpop.permute.xlu1 %190 }
  0x9d   :  { %3293 = vst [vmem:[#allocation89_spill] sm:$0xff] %v1935_v29 }
  0xa6   :  { %v2016_v0 = vpop.permute.xlu1 %186  ;;  %v137_v30 = vpop.permute.xlu0 %136 }
  0xa7   :  { %v195_v5 = vsel %vm192_vm2, %v1935_v29, %v2016_v0  ;;  %v145_v8 = vsel %vm142_vm3, %v1837_v10, %v137_v30 }
  0xa8   :  { %v2045_v33 = vsel %vm196_vm4, %v195_v5, 0.0  ;;  %v149_v2 = vsel %vm146_vm5, %v145_v8, 0.0  ;;  %v2070_v8 = vmul.f32 %v783_v34, %v1452_v1 }
  0xa9   :  { %v228_v3 = vmul.f32 %v3324_v4, %v2045_v33  ;;  %v169_v62 = vmul.f32 %v3325_v63, %v149_v2  ;;  %v2077_v4 = vmul.f32 0.0, %v799_v11  ;;  %v154_v32 = vmul.f32 %v1614_v21, %v149_v2 }
  0xaa   :  { %v2067_v5 = vpop.permute.xlu1 %380  ;;  %v257_v61 = vpop.permute.xlu0 %256  ;;  %3330 = vst [vmem:[#allocation121_spill] sm:$0xff] %v2070_v8  ;;  %v2089_v8 = vmul.f32 %v1617_v22, %v149_v2  ;;  %v2092_v45 = vmul.f32 %v1624_v23, %v149_v2  ;;  %v178_v31 = vmul.f32 %v1630_v25, %v149_v2  ;;  %v2101_v7 = vmul.f32 %v1633_v26, %v149_v2 }
  0xab   :  { %3329 = vst [vmem:[#allocation120_spill] sm:$0xff] %v2067_v5  ;;  %3333 = vst [vmem:[#allocation124_spill] sm:$0xff] %v2077_v4  ;;  %v230_v63 = vadd.f32 %v228_v3, %v169_v62  ;;  %v265_v12 = vsel %vm262_vm6, %v1933_v28, %v257_v61  ;;  %v2095_v62 = vmul.f32 %v1627_v24, %v149_v2  ;;  %v3335_v3 = vstv %s3327_s4 }
  0xac   :  { %v269_v34 = vsel %vm3158_vm7, %v265_v12, 0.0  ;;  %v204_v11 = vmul.f32 %v1640_v27, %v2045_v33  ;;  %v212_v1 = vmul.f32 %v1670_v35, %v2045_v33  ;;  %v220_v59 = vmul.f32 %v1673_v36, %v2045_v33 }
  0xad   :  { %v298_v4 = vmul.f32 %v3335_v3, %v269_v34  ;;  %v234_v58 = vmul.f32 %v1676_v38, %v2045_v33  ;;  %v242_v3 = vmul.f32 %v1679_v39, %v2045_v33  ;;  %v274_v56 = vmul.f32 %v1584_v13, %v269_v34 }
  0xae   :  { %v259_v12 = vpop.permute.xlu1 %258  ;;  %v139_v60 = vpop.permute.xlu0 %138  ;;  %v282_v52 = vmul.f32 %v1587_v14, %v269_v34  ;;  %v207_v50 = vadd.f32 %v204_v11, %v154_v32  ;;  %vm526_vm7 = vcmp.lt.s32.totalorder %v1553_v6, 125 }
  0xaf   :  { %v2113_v55 = vadd.f32 %v298_v4, %v230_v63  ;;  %v263_v2 = vsel %vm262_vm6, %v259_v12, %v1933_v28  ;;  %v264_v54 = vsel %vm262_vm6, %v257_v61, %v259_v12  ;;  %v143_v57 = vsel %vm142_vm3, %v139_v60, %v1837_v10 }
  0xb0   :  { %v270_v53 = vsel %vm3156_vm8, %v264_v54, 0.0  ;;  %v271_v4 = vsel %vm268_vm9, %v263_v2, 0.0  ;;  %v290_v61 = vmul.f32 %v1598_v17, %v269_v34  ;;  %v304_v63 = vmul.f32 %v1601_v18, %v269_v34 }
  0xb1   :  { %3336 = vst [vmem:[#allocation126_spill] sm:$0xff] %v2113_v55  ;;  %v312_v12 = vmul.f32 %v1608_v19, %v269_v34  ;;  %v144_v28 = vsel %vm142_vm3, %v137_v30, %v139_v60  ;;  %v2137_v10 = vmul.f32 %v1611_v20, %v269_v34  ;;  %v2140_v54 = vmul.f32 %v1584_v13, %v270_v53 }
  0xb2   :  { %v151_v2 = vsel %vm148_vm10, %v143_v57, 0.0  ;;  %v2144_v51 = vpop.permute.xlu1 %384  ;;  %v2147_v5 = vmul.f32 %v1584_v13, %v271_v4  ;;  %v2150_v49 = vmul.f32 %v1587_v14, %v270_v53  ;;  %v2153_v60 = vmul.f32 %v1587_v14, %v271_v4 }
  0xb3   :  { %3337 = vst [vmem:[#allocation127_spill] sm:$0xff] %v2144_v51  ;;  %v2156_v30 = vmul.f32 %v1598_v17, %v270_v53  ;;  %v2159_v34 = vmul.f32 %v1598_v17, %v271_v4  ;;  %v2163_v57 = vmul.f32 %v3338_v48, %v270_v53  ;;  %v2166_v32 = vmul.f32 %v1601_v18, %v270_v53 }
  0xb4   :  { %v150_v13 = vsel %vm147_vm11, %v144_v28, 0.0  ;;  %v2171_v11 = vmul.f32 %v1601_v18, %v271_v4  ;;  %v2174_v14 = vmul.f32 %v1608_v19, %v270_v53  ;;  %v2177_v51 = vmul.f32 %v1608_v19, %v271_v4  ;;  %v189_v18 = vpop.permute.xlu0 %188 }
  0xb5   :  { %v2180_v17 = vmul.f32 %v1611_v20, %v270_v53  ;;  %v2183_v48 = vmul.f32 %v1611_v20, %v271_v4  ;;  %v155_v37 = vmul.f32 %v1614_v21, %v150_v13  ;;  %v156_v47 = vmul.f32 %v1614_v21, %v151_v2 }
  0xb6   :  { %3339 = vst [vmem:[#allocation128_spill] sm:$0xff] %v2171_v11  ;;  %3340 = vst [vmem:[#allocation129_spill] sm:$0xff] %v2174_v14  ;;  %v161_v28 = vmul.f32 %v1617_v22, %v151_v2  ;;  %v2188_v46 = vpop.permute.xlu1 %452  ;;  %v160_v43 = vmul.f32 %v1617_v22, %v150_v13  ;;  %v165_v19 = vmul.f32 %v1624_v23, %v150_v13  ;;  %v3345_v53 = vstv %s3315_s7 }
  0xb7   :  { %3341 = vst [vmem:[#allocation130_spill] sm:$0xff] %v2177_v51  ;;  %3342 = vst [vmem:[#allocation131_spill] sm:$0xff] %v2180_v17  ;;  %v166_v51 = vmul.f32 %v1624_v23, %v151_v2  ;;  %v170_v17 = vmul.f32 %v3345_v53, %v150_v13  ;;  %v174_v20 = vmul.f32 %v1627_v24, %v150_v13  ;;  %vm460_vm8 = vcmp.lt.s32.totalorder %v1574_v9, 14 }
  0xb8   :  { %3343 = vst [vmem:[#allocation132_spill] sm:$0xff] %v2183_v48  ;;  %3344 = vst [vmem:[#allocation133_spill] sm:$0xff] %v2188_v46  ;;  %v175_v4 = vmul.f32 %v1627_v24, %v151_v2  ;;  %v179_v48 = vmul.f32 %v1630_v25, %v150_v13  ;;  %v180_v21 = vmul.f32 %v1630_v25, %v151_v2 }
  0xb9   :  { %v184_v14 = vmul.f32 %v1633_v26, %v150_v13  ;;  %v250_v46 = vmul.f32 %v1686_v40, %v2045_v33  ;;  %v193_v22 = vsel %vm192_vm2, %v189_v18, %v1935_v29  ;;  %v194_v23 = vsel %vm192_vm2, %v2016_v0, %v189_v18 }
  0xba   :  { %v185_v53 = vmul.f32 %v1633_v26, %v151_v2  ;;  %v215_v24 = vadd.f32 %v212_v1, %v2089_v8  ;;  %v223_v25 = vadd.f32 %v220_v59, %v2092_v45  ;;  %v237_v13 = vadd.f32 %v234_v58, %v2095_v62  ;;  %v2219_v1 = vpop.permute.xlu1 %520 }
  0xbb   :  { %v245_v44 = vadd.f32 %v242_v3, %v178_v31  ;;  %v277_v55 = vadd.f32 %v274_v56, %v207_v50  ;;  %v200_v33 = vsel %vm197_vm12, %v194_v23, 0.0  ;;  %v201_v29 = vsel %vm198_vm13, %v193_v22, 0.0  ;;  %3346 = vst [vmem:[#allocation134_spill] sm:$0xff] %v2219_v1 }
  0xbc   :  { %v285_v11 = vadd.f32 %v282_v52, %v215_v24  ;;  %v205_v0 = vmul.f32 %v1640_v27, %v200_v33  ;;  %v206_v26 = vmul.f32 %v1640_v27, %v201_v29  ;;  %v213_v2 = vmul.f32 %v1670_v35, %v200_v33 }
  0xbd   :  { %v253_v59 = vadd.f32 %v250_v46, %v2101_v7  ;;  %v214_v58 = vmul.f32 %v1670_v35, %v201_v29  ;;  %v221_v50 = vmul.f32 %v1673_v36, %v200_v33  ;;  %v3347_v56 = vstv %s3314_s5 }
  0xbe   :  { %v229_v31 = vmul.f32 %v3347_v56, %v200_v33  ;;  %v293_v8 = vadd.f32 %v290_v61, %v223_v25  ;;  %v307_v45 = vadd.f32 %v304_v63, %v237_v13  ;;  %v222_v52 = vmul.f32 %v1673_v36, %v201_v29  ;;  %v383_v36 = vpop.permute.xlu0 %382 }
  0xbf   :  { %v235_v62 = vmul.f32 %v1676_v38, %v200_v33  ;;  %v315_v3 = vadd.f32 %v312_v12, %v245_v44  ;;  %v208_v27 = vadd.f32 %v205_v0, %v155_v37  ;;  %v209_v18 = vadd.f32 %v206_v26, %v156_v47  ;;  %v3362_v0 = vld [vmem:[#allocation35_spill] sm:$0xff]  ;;  %v3363_v26 = vld [vmem:[#allocation37_spill] sm:$0xff] }
  0xc0   :  { %v231_v22 = vadd.f32 %v229_v31, %v170_v17  ;;  %v216_v35 = vadd.f32 %v213_v2, %v160_v43  ;;  %v236_v46 = vmul.f32 %v1676_v38, %v201_v29  ;;  %v243_v7 = vmul.f32 %v1679_v39, %v200_v33  ;;  %v2239_v38 = vpop.permute.xlu1 %524 }
  0xc1   :  { %v244_v61 = vmul.f32 %v1679_v39, %v201_v29  ;;  %v217_v44 = vadd.f32 %v214_v58, %v161_v28  ;;  %v224_v37 = vadd.f32 %v221_v50, %v165_v19  ;;  %v251_v47 = vmul.f32 %v1686_v40, %v200_v33  ;;  %3348 = vst [vmem:[#allocation135_spill] sm:$0xff] %v2239_v38  ;;  %v3365_v50 = vld [vmem:[#allocation43_spill] sm:$0xff] }
  0xc2   :  { %v252_v63 = vmul.f32 %v1686_v40, %v201_v29  ;;  %v225_v12 = vadd.f32 %v222_v52, %v166_v51  ;;  %v238_v17 = vadd.f32 %v235_v62, %v174_v20  ;;  %v239_v23 = vadd.f32 %v236_v46, %v175_v4  ;;  %v3356_v20 = vld [vmem:[#allocation129_spill] sm:$0xff]  ;;  %v3357_v4 = vld [vmem:[#allocation130_spill] sm:$0xff]  ;;  %v3366_v52 = vld [vmem:[#allocation39_spill] sm:$0xff] }
  0xc3   :  { %v331_v43 = vadd.f32 %v1690_v41, %v277_v55  ;;  %v246_v24 = vadd.f32 %v243_v7, %v179_v48  ;;  %v247_v39 = vadd.f32 %v244_v61, %v180_v21  ;;  %v254_v25 = vadd.f32 %v251_v47, %v184_v14  ;;  %v3359_v21 = vld [vmem:[#allocation131_spill] sm:$0xff]  ;;  %v3369_v46 = vld [vmem:[#allocation120_spill] sm:$0xff]  ;;  %v3372_v47 = vld [vmem:[#allocation42_spill] sm:$0xff] }
  0xc4   :  { %v255_v13 = vadd.f32 %v252_v63, %v185_v53  ;;  %v323_v28 = vadd.f32 %v2137_v10, %v253_v59  ;;  %v278_v19 = vadd.f32 %v2140_v54, %v208_v27  ;;  %v301_v33 = vadd.f32 %v2163_v57, %v231_v22  ;;  %v3351_v54 = vld [vmem:[#allocation128_spill] sm:$0xff]  ;;  %v3353_v57 = vld [vmem:[#allocation126_spill] sm:$0xff]  ;;  %v2276_v31 = vpop.permute.xlu1 %592  ;;  %v3368_v22 = vld [vmem:[#allocation127_spill] sm:$0xff] }
  0xc5   :  { %v339_v40 = vadd.f32 %v1694_v42, %v285_v11  ;;  %v2246_v51 = vadd.f32 %v2147_v5, %v209_v18  ;;  %v286_v41 = vadd.f32 %v2150_v49, %v216_v35  ;;  %v2250_v55 = vadd.f32 %v2153_v60, %v217_v44  ;;  %v3354_v42 = vld [vmem:[#allocation36_spill] sm:$0xff]  ;;  %v2262_v5 = vpop.permute.xlu0 %450  ;;  %v3364_v59 = vld [vmem:[#allocation38_spill] sm:$0xff]  ;;  %v3371_v44 = vld [vmem:[#allocation133_spill] sm:$0xff] }
  0xc6   :  { %v294_v29 = vadd.f32 %v2156_v30, %v224_v37  ;;  %v2254_v14 = vadd.f32 %v2159_v34, %v225_v12  ;;  %v308_v10 = vadd.f32 %v2166_v32, %v238_v17  ;;  %v2258_v48 = vadd.f32 %v3351_v54, %v239_v23  ;;  %3355 = vst [vmem:[#allocation126_spill] sm:$0xff] %v2262_v5  ;;  %v3360_v53 = vld [vmem:[#allocation132_spill] sm:$0xff]  ;;  %v3373_v12 = vld [vmem:[#allocation45_spill] sm:$0xff] }
  0xc7   :  { %3349 = vst [vmem:[#allocation136_spill] sm:$0xff] %v2250_v55  ;;  %v354_v11 = vadd.f32 %v3354_v42, %v3353_v57  ;;  %v316_v49 = vadd.f32 %v3356_v20, %v246_v24  ;;  %v2266_v60 = vadd.f32 %v3357_v4, %v247_v39  ;;  %v324_v30 = vadd.f32 %v3359_v21, %v254_v25  ;;  %v3367_v27 = vld [vmem:[#allocation40_spill] sm:$0xff] }
  0xc8   :  { %3350 = vst [vmem:[#allocation137_spill] sm:$0xff] %v2254_v14  ;;  %3352 = vst [vmem:[#allocation128_spill] sm:$0xff] %v2258_v48  ;;  %v2270_v34 = vadd.f32 %v3360_v53, %v255_v13  ;;  %v347_v32 = vadd.f32 %v3362_v0, %v293_v8  ;;  %v361_v2 = vadd.f32 %v3363_v26, %v307_v45  ;;  %v3370_v45 = vld [vmem:[#allocation41_spill] sm:$0xff]  ;;  %v3374_v23 = vld [vmem:[#allocation44_spill] sm:$0xff] }
  0xc9   :  { %3358 = vst [vmem:[#allocation36_spill] sm:$0xff] %v2266_v60  ;;  %v369_v58 = vadd.f32 %v3364_v59, %v315_v3  ;;  %v355_v56 = vadd.f32 %v3365_v50, %v301_v33  ;;  %v377_v62 = vadd.f32 %v3366_v52, %v323_v28  ;;  %v332_v18 = vadd.f32 %v3367_v27, %v278_v19  ;;  %v3376_v25 = vld [vmem:[#allocation48_spill] sm:$0xff]  ;;  %v3377_v28 = vld [vmem:[#allocation49_spill] sm:$0xff]  ;;  %v2308_v42 = vpop.permute.xlu0 %454  ;;  %v3382_v27 = vld [vmem:[#allocation50_spill] sm:$0xff] }
  0xca   :  { %3361 = vst [vmem:[#allocation129_spill] sm:$0xff] %v2270_v34  ;;  %v387_v35 = vsel %vm386_vm1, %v383_v36, %v3368_v22  ;;  %v388_v8 = vsel %vm386_vm1, %v3369_v46, %v383_v36  ;;  %v340_v3 = vadd.f32 %v3370_v45, %v286_v41  ;;  %v458_v37 = vsel %vm3159_vm0, %v2262_v5, %v3371_v44  ;;  %v3375_v36 = vld [vmem:[#allocation66_spill] sm:$0xff]  ;;  %v3412_v34 = vld [vmem:[#allocation64_spill] sm:$0xff] }
  0xcb   :  { %v393_v7 = vsel %vm3157_vm14, %v388_v8, 0.0  ;;  %v394_v61 = vsel %vm391_vm15, %v387_v35, 0.0  ;;  %v348_v63 = vadd.f32 %v3372_v47, %v294_v29  ;;  %v362_v17 = vadd.f32 %v3373_v12, %v308_v10  ;;  %v3380_v29 = vld [vmem:[#allocation46_spill] sm:$0xff]  ;;  %v3381_v10 = vld [vmem:[#allocation47_spill] sm:$0xff] }
  0xcc   :  { %v398_v24 = vmul.f32 %v3374_v23, %v393_v7  ;;  %v594_v39 = vsel %vm142_vm3, %v2276_v31, %v3375_v36  ;;  %v406_v13 = vmul.f32 %v3376_v25, %v393_v7  ;;  %v414_v19 = vmul.f32 %v3377_v28, %v393_v7 }
  0xcd   :  { %v3378_v33 = vstv %s3227_s18  ;;  %v370_v20 = vadd.f32 %v3380_v29, %v316_v49  ;;  %v378_v4 = vadd.f32 %v3381_v10, %v324_v30  ;;  %v399_v21 = vmul.f32 %v3374_v23, %v394_v61  ;;  %v3389_v10 = vld [vmem:[#allocation56_spill] sm:$0xff]  ;;  %s1364_s18 = smov 112  }
  0xce   :  { %v422_v41 = vmul.f32 %v3378_v33, %v393_v7  ;;  %v3379_v54 = vmov %v3378_v33  ;;  %v463_v53 = vsel %vm460_vm8, %v458_v37, 0.0  ;;  %vm530_vm14 = vcmp.lt.s32.totalorder %v1574_v9, 13 }
  0xcf   :  { %v423_v57 = vmul.f32 %v3379_v54, %v394_v61  ;;  %v407_v0 = vmul.f32 %v3376_v25, %v394_v61  ;;  %v599_v50 = vsel %vm148_vm10, %v594_v39, 0.0  ;;  %vm531_vm0 = vcmp.lt.s32.totalorder %v1593_v15, 13  ;;  %v3384_v39 = vld [vmem:[#allocation52_spill] sm:$0xff] }
  0xd0   :  { %v424_v26 = vadd.f32 %v422_v41, %v354_v11  ;;  %v401_v49 = vadd.f32 %v398_v24, %v331_v43  ;;  %v2323_v30 = vadd.f32 %v399_v21, %v332_v18  ;;  %v415_v52 = vmul.f32 %v3377_v28, %v394_v61  ;;  %v3385_v43 = vld [vmem:[#allocation53_spill] sm:$0xff]  ;;  %v3392_v28 = vld [vmem:[#allocation62_spill] sm:$0xff] }
  0xd1   :  { %v2317_v59 = vadd.f32 %v423_v57, %v355_v56  ;;  %v428_v35 = vmul.f32 %v3382_v27, %v393_v7  ;;  %v409_v8 = vadd.f32 %v406_v13, %v339_v40  ;;  %v2327_v45 = vadd.f32 %v407_v0, %v340_v3  ;;  %v3383_v56 = vld [vmem:[#allocation51_spill] sm:$0xff]  ;;  %v3386_v57 = vld [vmem:[#allocation54_spill] sm:$0xff]  ;;  %v523_v3 = vpop.permute.xlu0 %522 }
  0xd2   :  { %v417_v11 = vadd.f32 %v414_v19, %v347_v32  ;;  %v436_v37 = vmul.f32 %v3383_v56, %v393_v7  ;;  %v2330_v47 = vadd.f32 %v415_v52, %v348_v63  ;;  %v429_v12 = vmul.f32 %v3382_v27, %v394_v61  ;;  %v3387_v32 = vld [vmem:[#allocation55_spill] sm:$0xff]  ;;  %v3390_v52 = vld [vmem:[#allocation57_spill] sm:$0xff] }
  0xd3   :  { %v444_v33 = vmul.f32 %v3384_v39, %v393_v7  ;;  %v468_v18 = vmul.f32 %v3385_v43, %v463_v53  ;;  %v431_v24 = vadd.f32 %v428_v35, %v361_v2  ;;  %v437_v41 = vmul.f32 %v3383_v56, %v394_v61  ;;  %v3391_v35 = vld [vmem:[#allocation58_spill] sm:$0xff] }
  0xd4   :  { %v445_v54 = vmul.f32 %v3384_v39, %v394_v61  ;;  %v476_v40 = vmul.f32 %v3386_v57, %v463_v53  ;;  %v2338_v13 = vadd.f32 %v429_v12, %v362_v17  ;;  %v484_v19 = vmul.f32 %v3387_v32, %v463_v53  ;;  %v2350_v17 = vpop.permute.xlu1 %656 }
  0xd5   :  { %v3388_v63 = vstv %s3238_s8  ;;  %v498_v21 = vmul.f32 %v3389_v10, %v463_v53  ;;  %v439_v0 = vadd.f32 %v436_v37, %v369_v58  ;;  %v2344_v7 = vadd.f32 %v437_v41, %v370_v20  ;;  %v3396_v58 = vld [vmem:[#allocation68_spill] sm:$0xff] }
  0xd6   :  { %v492_v29 = vmul.f32 %v3388_v63, %v463_v53  ;;  %v506_v2 = vmul.f32 %v3390_v52, %v463_v53  ;;  %v514_v5 = vmul.f32 %v3391_v35, %v463_v53  ;;  %v447_v56 = vadd.f32 %v444_v33, %v377_v62  ;;  %v3394_v63 = vld [vmem:[#allocation67_spill] sm:$0xff]  ;;  %v3398_v33 = vld [vmem:[#allocation89_spill] sm:$0xff] }
  0xd7   :  { %v2348_v61 = vadd.f32 %v445_v54, %v378_v4  ;;  %v471_v39 = vadd.f32 %v468_v18, %v401_v49  ;;  %v479_v12 = vadd.f32 %v476_v40, %v409_v8  ;;  %v2353_v25 = vmul.f32 %v3392_v28, %v599_v50  ;;  %v591_v18 = vpop.permute.xlu0 %590  ;;  %v3401_v54 = vld [vmem:[#allocation70_spill] sm:$0xff] }
  0xd8   :  { %v494_v27 = vadd.f32 %v492_v29, %v424_v26  ;;  %v2356_v23 = vmul.f32 %v3394_v63, %v599_v50  ;;  %v2359_v20 = vmul.f32 %v3396_v58, %v599_v50  ;;  %v487_v37 = vadd.f32 %v484_v19, %v417_v11  ;;  %v3403_v19 = vld [vmem:[#allocation59_spill] sm:$0xff] }
  0xd9   :  { %3393 = vst [vmem:[#allocation130_spill] sm:$0xff] %v2353_v25  ;;  %v501_v53 = vadd.f32 %v498_v21, %v431_v24  ;;  %v527_v62 = vsel %vm526_vm7, %v523_v3, %v2239_v38  ;;  %v528_v4 = vsel %vm526_vm7, %v2219_v1, %v523_v3  ;;  %v509_v26 = vadd.f32 %v506_v2, %v439_v0  ;;  %v3399_v24 = vld [vmem:[#allocation69_spill] sm:$0xff]  ;;  %v3406_v21 = vld [vmem:[#allocation60_spill] sm:$0xff]  ;;  %v3409_v25 = vld [vmem:[#allocation63_spill] sm:$0xff] }
  0xda   :  { %3395 = vst [vmem:[#allocation131_spill] sm:$0xff] %v2356_v23  ;;  %3397 = vst [vmem:[#allocation132_spill] sm:$0xff] %v2359_v20  ;;  %v517_v49 = vadd.f32 %v514_v5, %v447_v56  ;;  %v533_v8 = vsel %vm530_vm14, %v528_v4, 0.0  ;;  %v658_v11 = vsel %vm192_vm2, %v2350_v17, %v3398_v33  ;;  %v2374_v41 = vmul.f32 %v3399_v24, %v599_v50  ;;  %v3404_v56 = vld [vmem:[#allocation71_spill] sm:$0xff]  ;;  %v3407_v2 = vld [vmem:[#allocation61_spill] sm:$0xff] }
  0xdb   :  { %v2377_v40 = vmul.f32 %v3401_v54, %v599_v50  ;;  %v534_v3 = vsel %vm531_vm0, %v527_v62, 0.0  ;;  %v538_v5 = vmul.f32 %v3403_v19, %v533_v8  ;;  %v2383_v29 = vmul.f32 %v3404_v56, %v599_v50 }
  0xdc   :  { %3400 = vst [vmem:[#allocation35_spill] sm:$0xff] %v2374_v41  ;;  %v546_v0 = vmul.f32 %v3406_v21, %v533_v8  ;;  %v554_v4 = vmul.f32 %v3407_v2, %v533_v8  ;;  %v3408_v20 = vstv %s1651_s20  ;;  %v568_v41 = vmul.f32 %v3409_v25, %v533_v8 }
  0xdd   :  { %3402 = vst [vmem:[#allocation37_spill] sm:$0xff] %v2377_v40  ;;  %3405 = vst [vmem:[#allocation38_spill] sm:$0xff] %v2383_v29  ;;  %v562_v23 = vmul.f32 %v3408_v20, %v533_v8  ;;  %v663_v40 = vsel %vm198_vm13, %v658_v11, 0.0  ;;  %v595_v62 = vsel %vm142_vm3, %v591_v18, %v2276_v31  ;;  %v596_v50 = vsel %vm142_vm3, %v3375_v36, %v591_v18  ;;  %v2398_v29 = vpop.permute.xlu1 %720  ;;  %v3416_v36 = vld [vmem:[#allocation65_spill] sm:$0xff] }
  0xde   :  { %v2401_v1 = vmul.f32 %v3403_v19, %v534_v3  ;;  %v2404_v20 = vmul.f32 %v3406_v21, %v534_v3  ;;  %v576_v60 = vmul.f32 %v3412_v34, %v533_v8  ;;  %v2407_v11 = vadd.f32 %v538_v5, %v471_v39  ;;  %v3420_v5 = vld [vmem:[#allocation72_spill] sm:$0xff] }
  0xdf   :  { %v564_v38 = vadd.f32 %v562_v23, %v494_v27  ;;  %v2410_v48 = vmul.f32 %v3407_v2, %v534_v3  ;;  %v3414_v31 = vstv %s1651_s20  ;;  %v584_v18 = vmul.f32 %v3416_v36, %v533_v8  ;;  %s1363_s20 = smov 48  }
  0xe0   :  { %3410 = vst [vmem:[#allocation43_spill] sm:$0xff] %v2401_v1  ;;  %3411 = vst [vmem:[#allocation39_spill] sm:$0xff] %v2404_v20  ;;  %v2414_v14 = vmul.f32 %v3414_v31, %v534_v3  ;;  %v2417_v55 = vadd.f32 %v546_v0, %v479_v12  ;;  %v2419_v1 = vadd.f32 %v554_v4, %v487_v37  ;;  %v597_v12 = vsel %vm146_vm5, %v596_v50, 0.0  ;;  %v3423_v37 = vld [vmem:[#allocation73_spill] sm:$0xff]  ;;  %v3425_v4 = vld [vmem:[#allocation74_spill] sm:$0xff] }
  0xe1   :  { %3413 = vst [vmem:[#allocation40_spill] sm:$0xff] %v2410_v48  ;;  %v2422_v20 = vmul.f32 %v3409_v25, %v534_v3  ;;  %v2425_v23 = vmul.f32 %v3412_v34, %v534_v3  ;;  %v2427_v27 = vadd.f32 %v568_v41, %v501_v53  ;;  %v2430_v39 = vmul.f32 %v3416_v36, %v534_v3  ;;  %v3428_v3 = vld [vmem:[#allocation75_spill] sm:$0xff]  ;;  %v2457_v48 = vpop.permute.xlu1 %838 }
  0xe2   :  { %3415 = vst [vmem:[#allocation127_spill] sm:$0xff] %v2414_v14  ;;  %v2433_v31 = vmul.f32 %v3420_v5, %v663_v40  ;;  %v2437_v8 = vadd.f32 %v576_v60, %v509_v26  ;;  %v2440_v0 = vmul.f32 %v3423_v37, %v663_v40  ;;  %v2443_v14 = vmul.f32 %v3425_v4, %v663_v40  ;;  %v655_v26 = vpop.permute.xlu0 %654 }
  0xe3   :  { %3417 = vst [vmem:[#allocation120_spill] sm:$0xff] %v2422_v20  ;;  %3418 = vst [vmem:[#allocation41_spill] sm:$0xff] %v2425_v23  ;;  %v598_v53 = vsel %vm147_vm11, %v595_v62, 0.0  ;;  %v2447_v41 = vadd.f32 %v584_v18, %v517_v49  ;;  %v3430_v23 = vld [vmem:[#allocation76_spill] sm:$0xff]  ;;  %v3432_v50 = vstv %s3271_s27  ;;  %vm461_vm3 = vcmp.lt.s32.totalorder %v1593_v15, 14 }
  0xe4   :  { %3419 = vst [vmem:[#allocation133_spill] sm:$0xff] %v2430_v39  ;;  %3421 = vst [vmem:[#allocation42_spill] sm:$0xff] %v2433_v31  ;;  %v2450_v39 = vmul.f32 %v3428_v3, %v663_v40  ;;  %v2453_v20 = vmul.f32 %v3430_v23, %v663_v40  ;;  %v626_v60 = vmul.f32 %v3432_v50, %v597_v12  ;;  %vm3471_vm5 = vcmp.ge.s32.totalorder %v1574_v9, 1 }
  0xe5   :  { %3422 = vst [vmem:[#allocation45_spill] sm:$0xff] %v2437_v8  ;;  %3424 = vst [vmem:[#allocation66_spill] sm:$0xff] %v2440_v0  ;;  %v2464_v49 = vmul.f32 %v3392_v28, %v597_v12  ;;  %v2467_v62 = vmul.f32 %v3394_v63, %v597_v12  ;;  %v2470_v18 = vmul.f32 %v3396_v58, %v597_v12  ;;  %vm462_vm10 = vcmp.lt.s32.totalorder %v1595_v16, 14 }
  0xe6   :  { %3426 = vst [vmem:[#allocation46_spill] sm:$0xff] %v2443_v14  ;;  %3427 = vst [vmem:[#allocation47_spill] sm:$0xff] %v2447_v41  ;;  %v3433_v14 = vld [vmem:[#allocation77_spill] sm:$0xff]  ;;  %v2473_v50 = vmul.f32 %v3392_v28, %v598_v53  ;;  %v659_v8 = vsel %vm192_vm2, %v655_v26, %v2350_v17  ;;  %v660_v28 = vsel %vm192_vm2, %v3398_v33, %v655_v26  ;;  %vm392_vm2 = vcmp.lt.s32.totalorder %v1595_v16, 15 }
  0xe7   :  { %3429 = vst [vmem:[#allocation53_spill] sm:$0xff] %v2450_v39  ;;  %3431 = vst [vmem:[#allocation54_spill] sm:$0xff] %v2453_v20  ;;  %v2461_v0 = vmul.f32 %v3433_v14, %v663_v40  ;;  %v2476_v20 = vmul.f32 %v3394_v63, %v598_v53  ;;  %v2479_v39 = vmul.f32 %v3396_v58, %v598_v53  ;;  %v661_v26 = vsel %vm196_vm4, %v660_v28, 0.0 }
  0xe8   :  { %3435 = vst [vmem:[#allocation56_spill] sm:$0xff] %v2473_v50  ;;  %v2481_v40 = vadd.f32 %v626_v60, %v564_v38  ;;  %v840_v63 = vsel %vm386_vm1, %v2457_v48, %v3368_v22  ;;  %v3440_v38 = vstv %s3271_s27  ;;  %v2502_v60 = vmul.f32 %v3399_v24, %v597_v12  ;;  %v3455_v50 = vld [vmem:[#allocation81_spill] sm:$0xff]  ;;  %s2995_s27 = sld [smem:[#allocation3 + $0x4c]] }
  0xe9   :  { %3434 = vst [vmem:[#allocation55_spill] sm:$0xff] %v2461_v0  ;;  %3436 = vst [vmem:[#allocation57_spill] sm:$0xff] %v2476_v20  ;;  %v3439_v0 = vld [vmem:[#allocation88_spill] sm:$0xff]  ;;  %v2499_v58 = vmul.f32 %v3440_v38, %v598_v53  ;;  %v2513_v33 = vmul.f32 %v3401_v54, %v598_v53  ;;  %v2519_v38 = vsel %vm197_vm12, %v659_v8, 0.0  ;;  %vm3468_vm4 = vcmp.lt.s32.totalorder %v1553_v6, 126 }
  0xea   :  { %3437 = vst [vmem:[#allocation58_spill] sm:$0xff] %v2479_v39  ;;  %3438 = vst [vmem:[#allocation62_spill] sm:$0xff] %v2481_v40  ;;  %v722_v31 = vsel %vm262_vm6, %v2398_v29, %v3439_v0  ;;  %v2505_v40 = vmul.f32 %v3399_v24, %v598_v53  ;;  %v2510_v39 = vmul.f32 %v3401_v54, %v597_v12  ;;  %v2532_v54 = vsel %vm391_vm15, %v840_v63, 0.0  ;;  %v3453_v20 = vld [vmem:[#allocation80_spill] sm:$0xff] }
  0xeb   :  { %3441 = vst [vmem:[#allocation67_spill] sm:$0xff] %v2499_v58  ;;  %v727_v17 = vsel %vm268_vm9, %v722_v31, 0.0  ;;  %3444 = vst [vmem:[#allocation69_spill] sm:$0xff] %v2513_v33  ;;  %v2522_v58 = vmul.f32 %v3404_v56, %v597_v12  ;;  %v2525_v24 = vmul.f32 %v3404_v56, %v598_v53  ;;  %v3448_v31 = vld [vmem:[#allocation78_spill] sm:$0xff]  ;;  %v3451_v33 = vld [vmem:[#allocation79_spill] sm:$0xff]  ;;  %v719_v53 = vpop.permute.xlu0 %718  ;;  %v2551_v63 = vmul.f32 %v3420_v5, %v661_v26 }
  0xec   :  { %3442 = vst [vmem:[#allocation68_spill] sm:$0xff] %v2505_v40  ;;  %3443 = vst [vmem:[#allocation89_spill] sm:$0xff] %v2510_v39  ;;  %v2528_v40 = vmul.f32 %v3448_v31, %v727_v17  ;;  %v2535_v28 = vmul.f32 %v3451_v33, %v727_v17  ;;  %v2538_v8 = vmul.f32 %v3453_v20, %v727_v17  ;;  %v3457_v39 = vld [vmem:[#allocation82_spill] sm:$0xff]  ;;  %vm532_vm11 = vcmp.lt.s32.totalorder %v1595_v16, 13 }
  0xed   :  { %3445 = vst [vmem:[#allocation70_spill] sm:$0xff] %v2519_v38  ;;  %3446 = vst [vmem:[#allocation59_spill] sm:$0xff] %v2522_v58  ;;  %v2541_v12 = vmul.f32 %v3455_v50, %v727_v17  ;;  %v2544_v56 = vmul.f32 %v3457_v39, %v727_v17  ;;  %v2580_v39 = vmul.f32 %v3428_v3, %v2519_v38  ;;  %vm3502_vm12 = vcmp.lt.s32.totalorder %v1574_v9, 15 }
  0xee   :  { %3447 = vst [vmem:[#allocation71_spill] sm:$0xff] %v2525_v24  ;;  %3449 = vst [vmem:[#allocation60_spill] sm:$0xff] %v2528_v40  ;;  %v3459_v24 = vld [vmem:[#allocation85_spill] sm:$0xff] }
  0xef   :  { %3450 = vst [vmem:[#allocation61_spill] sm:$0xff] %v2532_v54  ;;  %3452 = vst [vmem:[#allocation63_spill] sm:$0xff] %v2535_v28  ;;  %v2548_v40 = vmul.f32 %v3459_v24, %v727_v17  ;;  %v2555_v28 = vmul.f32 %v3420_v5, %v2519_v38  ;;  %v2569_v17 = vmul.f32 %v3425_v4, %v2519_v38  ;;  %v903_v5 = vpop.permute.xlu1 %902  ;;  %v837_v41 = vpop.permute.xlu0 %836 }
  0xf0   :  { %3454 = vst [vmem:[#allocation64_spill] sm:$0xff] %v2538_v8  ;;  %3456 = vst [vmem:[#allocation65_spill] sm:$0xff] %v2541_v12  ;;  %v2558_v8 = vmul.f32 %v3423_v37, %v661_v26  ;;  %v2562_v12 = vmul.f32 %v3423_v37, %v2519_v38  ;;  %v724_v37 = vsel %vm262_vm6, %v3439_v0, %v719_v53 }
  0xf1   :  { %3458 = vst [vmem:[#allocation72_spill] sm:$0xff] %v2544_v56  ;;  %3460 = vst [vmem:[#allocation73_spill] sm:$0xff] %v2548_v40  ;;  %v2565_v56 = vmul.f32 %v3425_v4, %v661_v26  ;;  %v3465_v40 = vstv %s1773_s28  ;;  %v457_v4 = vsel %vm3468_vm4, %v3371_v44, %v2308_v42  ;;  %v2603_v0 = vsel %vm3471_vm5, %v724_v37, 0.0 }
  0xf2   :  { %3461 = vst [vmem:[#allocation74_spill] sm:$0xff] %v2555_v28  ;;  %3462 = vst [vmem:[#allocation75_spill] sm:$0xff] %v2562_v12  ;;  %v2573_v54 = vmul.f32 %v3465_v40, %v661_v26  ;;  %v2576_v28 = vmul.f32 %v3428_v3, %v661_v26  ;;  %v2590_v40 = vmul.f32 %v3430_v23, %v661_v26 }
  0xf3   :  { %3463 = vst [vmem:[#allocation76_spill] sm:$0xff] %v2565_v56  ;;  %3464 = vst [vmem:[#allocation77_spill] sm:$0xff] %v2569_v17  ;;  %v723_v3 = vsel %vm262_vm6, %v719_v53, %v2398_v29  ;;  %v3473_v53 = vstv %s3238_s8  ;;  %v2617_v37 = vmul.f32 %v3433_v14, %v661_v26  ;;  %vm3476_vm6 = vcmp.ge.s32.totalorder %v1593_v15, 1  ;;  %s1362_s8 = smov 32  }
  0xf4   :  { %3466 = vst [vmem:[#allocation88_spill] sm:$0xff] %v2573_v54  ;;  %3467 = vst [vmem:[#allocation78_spill] sm:$0xff] %v2580_v39  ;;  %v2594_v54 = vmul.f32 %v3430_v23, %v2519_v38  ;;  %v464_v39 = vsel %vm461_vm3, %v457_v4, 0.0  ;;  %v2625_v24 = vsel %vm3476_vm6, %v723_v3, 0.0  ;;  %v760_v16 = vmul.f32 %v3455_v50, %v2603_v0 }
  0xf5   :  { %3469 = vst [vmem:[#allocation79_spill] sm:$0xff] %v2590_v40  ;;  %v469_v44 = vmul.f32 %v3385_v43, %v464_v39  ;;  %v477_v17 = vmul.f32 %v3386_v57, %v464_v39  ;;  %vm3472_vm9 = vmmov %vm3468_vm4  ;;  %v485_v29 = vmul.f32 %v3387_v32, %v464_v39  ;;  %v499_v4 = vmul.f32 %v3389_v10, %v464_v39 }
  0xf6   :  { %3470 = vst [vmem:[#allocation80_spill] sm:$0xff] %v2594_v54  ;;  %v904_v23 = vsel %vm3472_vm9, %v903_v5, %v2308_v42  ;;  %v493_v54 = vmul.f32 %v3473_v53, %v464_v39  ;;  %v507_v12 = vmul.f32 %v3390_v52, %v464_v39  ;;  %3474 = vst [vmem:[#allocation81_spill] sm:$0xff] %v2617_v37  ;;  %v3478_v53 = vstv %s1775_s22 }
  0xf7   :  { %v2621_v40 = vmul.f32 %v3433_v14, %v2519_v38  ;;  %3477 = vst [vmem:[#allocation139_spill] sm:$0xff] %v2625_v24  ;;  %v515_v58 = vmul.f32 %v3391_v35, %v464_v39  ;;  %v2632_v56 = vmul.f32 %v3478_v53, %v2603_v0  ;;  %v2635_v26 = vadd.f32 %v469_v44, %v2323_v30  ;;  %v3485_v53 = vld [vmem:[#allocation83_spill] sm:$0xff]  ;;  %v967_v44 = vpop.permute.xlu1 %966  ;;  %vm3508_vm13 = vmmov %vm3468_vm4 }
  0xf8   :  { %v2638_v37 = vadd.f32 %v493_v54, %v2317_v59  ;;  %v2642_v14 = vsel %vm461_vm3, %v904_v23, 0.0  ;;  %v2645_v3 = vadd.f32 %v477_v17, %v2327_v45  ;;  %v2648_v39 = vadd.f32 %v485_v29, %v2330_v47  ;;  %v3489_v17 = vld [vmem:[#allocation84_spill] sm:$0xff]  ;;  %v3491_v29 = vld [vmem:[#allocation86_spill] sm:$0xff]  ;;  %vm3509_vm15 = vmmov %vm3468_vm4 }
  0xf9   :  { %3475 = vst [vmem:[#allocation138_spill] sm:$0xff] %v2621_v40  ;;  %3479 = vst [vmem:[#allocation140_spill] sm:$0xff] %v2632_v56  ;;  %v2651_v38 = vadd.f32 %v499_v4, %v2338_v13  ;;  %v333_v30 = vadd.f32 %v3485_v53, %v2246_v51  ;;  %v2656_v59 = vadd.f32 %v507_v12, %v2344_v7  ;;  %v3488_v13 = vld [vmem:[#allocation136_spill] sm:$0xff]  ;;  %v3490_v51 = vld [vmem:[#allocation137_spill] sm:$0xff] }
  0xfa   :  { %3480 = vst [vmem:[#allocation141_spill] sm:$0xff] %v2638_v37  ;;  %3481 = vst [vmem:[#allocation142_spill] sm:$0xff] %v2642_v14  ;;  %v2659_v54 = vadd.f32 %v515_v58, %v2348_v61  ;;  %v389_v45 = vsel %vm386_vm1, %v3368_v22, %v3369_v46  ;;  %v841_v47 = vsel %vm386_vm1, %v837_v41, %v2457_v48  ;;  %v3492_v58 = vld [vmem:[#allocation128_spill] sm:$0xff]  ;;  %v3493_v12 = vld [vmem:[#allocation87_spill] sm:$0xff] }
  0xfb   :  { %3482 = vst [vmem:[#allocation143_spill] sm:$0xff] %v2645_v3  ;;  %3483 = vst [vmem:[#allocation144_spill] sm:$0xff] %v2648_v39  ;;  %v341_v23 = vadd.f32 %v3489_v17, %v3488_v13  ;;  %v349_v4 = vadd.f32 %v3491_v29, %v3490_v51  ;;  %v395_v7 = vsel %vm392_vm2, %v389_v45, 0.0  ;;  %v842_v61 = vsel %vm386_vm1, %v3368_v22, %v837_v41  ;;  %v3494_v53 = vld [vmem:[#allocation36_spill] sm:$0xff]  ;;  %v3495_v37 = vld [vmem:[#allocation90_spill] sm:$0xff]  ;;  %v901_v41 = vpop.permute.xlu0 %900 }
  0xfc   :  { %3484 = vst [vmem:[#allocation145_spill] sm:$0xff] %v2651_v38  ;;  %3486 = vst [vmem:[#allocation83_spill] sm:$0xff] %v2656_v59  ;;  %v363_v46 = vadd.f32 %v3493_v12, %v3492_v58  ;;  %v371_v56 = vadd.f32 %v3495_v37, %v3494_v53  ;;  %v3496_v48 = vld [vmem:[#allocation129_spill] sm:$0xff]  ;;  %v3497_v40 = vld [vmem:[#allocation91_spill] sm:$0xff]  ;;  %v2691_v22 = vsel %vm3502_vm12, %v841_v47, 0.0  ;;  %v2698_v14 = vsel %vm392_vm2, %v842_v61, 0.0 }
  0xfd   :  { %3487 = vst [vmem:[#allocation146_spill] sm:$0xff] %v2659_v54  ;;  %v379_v54 = vadd.f32 %v3497_v40, %v3496_v48  ;;  %v3498_v13 = vld [vmem:[#allocation135_spill] sm:$0xff]  ;;  %v3499_v51 = vld [vmem:[#allocation44_spill] sm:$0xff]  ;;  %v3501_v38 = vld [vmem:[#allocation49_spill] sm:$0xff] }
  0xfe   :  { %v968_v17 = vsel %vm526_vm7, %v967_v44, %v3498_v13  ;;  %v400_v29 = vmul.f32 %v3499_v51, %v395_v7  ;;  %v3500_v45 = vld [vmem:[#allocation48_spill] sm:$0xff]  ;;  %v416_v39 = vmul.f32 %v3501_v38, %v395_v7  ;;  %v3503_v58 = vld [vmem:[#allocation50_spill] sm:$0xff]  ;;  %v3504_v12 = vld [vmem:[#allocation51_spill] sm:$0xff] }
  0xff   :  { %v408_v59 = vmul.f32 %v3500_v45, %v395_v7  ;;  %v430_v37 = vmul.f32 %v3503_v58, %v395_v7  ;;  %v438_v53 = vmul.f32 %v3504_v12, %v395_v7  ;;  %v3505_v40 = vld [vmem:[#allocation52_spill] sm:$0xff]  ;;  %v2702_v38 = vsel %vm531_vm0, %v968_v17, 0.0  ;;  %v3507_v45 = vld [vmem:[#allocation126_spill] sm:$0xff]  ;;  %vm3510_vm1 = vmmov %vm3468_vm4 }
 0x100   :  { %v446_v48 = vmul.f32 %v3505_v40, %v395_v7  ;;  %v403_v51 = vadd.f32 %v400_v29, %v333_v30  ;;  %3506 = vst [vmem:[#allocation136_spill] sm:$0xff] %v2702_v38  ;;  %v459_v47 = vsel %vm3508_vm13, %v2308_v42, %v3507_v45  ;;  %v905_v7 = vsel %vm3509_vm15, %v901_v41, %v903_v5  ;;  %v965_v38 = vpop.permute.xlu0 %964 }
 0x101   :  { %v411_v3 = vadd.f32 %v408_v59, %v341_v23  ;;  %v465_v58 = vsel %vm462_vm10, %v459_v47, 0.0  ;;  %v906_v30 = vsel %vm3510_vm1, %v2308_v42, %v901_v41  ;;  %v3511_v59 = vld [vmem:[#allocation134_spill] sm:$0xff]  ;;  %v419_v12 = vadd.f32 %v416_v39, %v349_v4 }
 0x102   :  { %v529_v15 = vsel %vm526_vm7, %v3498_v13, %v3511_v59  ;;  %v470_v23 = vmul.f32 %v3385_v43, %v465_v58  ;;  %v478_v61 = vmul.f32 %v3386_v57, %v465_v58  ;;  %v486_v17 = vmul.f32 %v3387_v32, %v465_v58 }
 0x103   :  { %v500_v29 = vmul.f32 %v3389_v10, %v465_v58  ;;  %v508_v5 = vmul.f32 %v3390_v52, %v465_v58  ;;  %v516_v40 = vmul.f32 %v3391_v35, %v465_v58  ;;  %v535_v42 = vsel %vm532_vm11, %v529_v15, 0.0  ;;  %v3513_v58 = vld [vmem:[#allocation94_spill] sm:$0xff] }
 0x104   :  { %v433_v41 = vadd.f32 %v430_v37, %v363_v46  ;;  %v441_v45 = vadd.f32 %v438_v53, %v371_v56  ;;  %v449_v47 = vadd.f32 %v446_v48, %v379_v54  ;;  %v473_v59 = vadd.f32 %v470_v23, %v403_v51  ;;  %v3515_v15 = vld [vmem:[#allocation98_spill] sm:$0xff] }
 0x105   :  { %v481_v43 = vadd.f32 %v478_v61, %v411_v3  ;;  %v489_v24 = vadd.f32 %v486_v17, %v419_v12  ;;  %v2729_v57 = vsel %vm460_vm8, %v905_v7, 0.0  ;;  %v2733_v32 = vsel %vm462_vm10, %v906_v30, 0.0  ;;  %v3516_v61 = vld [vmem:[#allocation106_spill] sm:$0xff] }
 0x106   :  { %v503_v10 = vadd.f32 %v500_v29, %v433_v41  ;;  %v511_v52 = vadd.f32 %v508_v5, %v441_v45  ;;  %v2735_v35 = vadd.f32 %v516_v40, %v449_v47  ;;  %v540_v39 = vmul.f32 %v3403_v19, %v535_v42  ;;  %v3518_v40 = vld [vmem:[#allocation107_spill] sm:$0xff]  ;;  %v3519_v41 = vld [vmem:[#allocation100_spill] sm:$0xff]  ;;  %v3520_v47 = vld [vmem:[#allocation110_spill] sm:$0xff] }
 0x107   :  { %v548_v56 = vmul.f32 %v3406_v21, %v535_v42  ;;  %v556_v54 = vmul.f32 %v3407_v2, %v535_v42  ;;  %v570_v3 = vmul.f32 %v3409_v25, %v535_v42  ;;  %v969_v4 = vsel %vm526_vm7, %v965_v38, %v967_v44 }
 0x108   :  { %v2743_v46 = vadd.f32 %v540_v39, %v473_v59  ;;  %v578_v37 = vmul.f32 %v3412_v34, %v535_v42  ;;  %v2747_v53 = vmul.f32 %v3416_v36, %v535_v42  ;;  %v970_v19 = vsel %vm526_vm7, %v3498_v13, %v965_v38 }
 0x109   :  { %v2752_v48 = vadd.f32 %v548_v56, %v481_v43  ;;  %v2754_v21 = vadd.f32 %v556_v54, %v489_v24  ;;  %v613_v25 = vadd.f32 %v2467_v62, %v2417_v55  ;;  %v738_v2 = vmul.f32 %v3451_v33, %v2603_v0  ;;  %v3512_v62 = vld [vmem:[#allocation93_spill] sm:$0xff]  ;;  %v3521_v43 = vld [vmem:[#allocation96_spill] sm:$0xff] }
 0x10a   :  { %v2760_v44 = vadd.f32 %v570_v3, %v503_v10  ;;  %v2762_v34 = vadd.f32 %v578_v37, %v511_v52  ;;  %v2766_v36 = vsel %vm530_vm14, %v969_v4, 0.0  ;;  %v605_v13 = vadd.f32 %v2464_v49, %v2407_v11  ;;  %v3522_v52 = vld [vmem:[#allocation76_spill] sm:$0xff]  ;;  %v3525_v3 = vld [vmem:[#allocation111_spill] sm:$0xff] }
 0x10b   :  { %v2772_v24 = vsel %vm532_vm11, %v970_v19, 0.0  ;;  %v677_v55 = vadd.f32 %v2558_v8, %v613_v25  ;;  %v856_v51 = vmul.f32 %v3512_v62, %v2691_v22  ;;  %v730_v38 = vmul.f32 %v3448_v31, %v2603_v0  ;;  %v3514_v8 = vld [vmem:[#allocation95_spill] sm:$0xff]  ;;  %v3527_v25 = vld [vmem:[#allocation85_spill] sm:$0xff] }
 0x10c   :  { %v920_v9 = vmul.f32 %v3513_v58, %v2729_v57  ;;  %v669_v7 = vadd.f32 %v2551_v63, %v605_v13  ;;  %v635_v11 = vadd.f32 %v2502_v60, %v2427_v27  ;;  %v984_v30 = vmul.f32 %v3514_v8, %v2766_v36  ;;  %v3517_v60 = vld [vmem:[#allocation92_spill] sm:$0xff]  ;;  %v3526_v37 = vld [vmem:[#allocation103_spill] sm:$0xff] }
 0x10d   :  { %v741_v49 = vadd.f32 %v738_v2, %v677_v55  ;;  %v848_v23 = vmul.f32 %v3515_v15, %v2691_v22  ;;  %v912_v17 = vmul.f32 %v3516_v61, %v2729_v57  ;;  %v621_v63 = vadd.f32 %v2470_v18, %v2419_v1  ;;  %v3523_v1 = vld [vmem:[#allocation47_spill] sm:$0xff] }
 0x10e   :  { %v733_v29 = vadd.f32 %v730_v38, %v669_v7  ;;  %v699_v12 = vadd.f32 %v2576_v28, %v635_v11  ;;  %v746_v27 = vmul.f32 %v3453_v20, %v2603_v0  ;;  %v976_v42 = vmul.f32 %v3518_v40, %v2766_v36  ;;  %v3524_v18 = vld [vmem:[#allocation59_spill] sm:$0xff]  ;;  %v3529_v11 = vld [vmem:[#allocation81_spill] sm:$0xff] }
 0x10f   :  { %v795_v5 = vadd.f32 %v3517_v60, %v741_v49  ;;  %v878_v45 = vmul.f32 %v3519_v41, %v2691_v22  ;;  %v942_v59 = vmul.f32 %v3520_v47, %v2729_v57  ;;  %v685_v39 = vadd.f32 %v3522_v52, %v621_v63  ;;  %v3528_v55 = vld [vmem:[#allocation99_spill] sm:$0xff]  ;;  %v3532_v63 = vld [vmem:[#allocation89_spill] sm:$0xff] }
 0x110   :  { %v787_v10 = vadd.f32 %v3521_v43, %v733_v29  ;;  %v763_v28 = vadd.f32 %v760_v16, %v699_v12  ;;  %v651_v56 = vadd.f32 %v3524_v18, %v3523_v1  ;;  %v1006_v4 = vmul.f32 %v3525_v3, %v2766_v36  ;;  %v3530_v29 = vld [vmem:[#allocation112_spill] sm:$0xff]  ;;  %v3534_v1 = vld [vmem:[#allocation102_spill] sm:$0xff] }
 0x111   :  { %v859_v54 = vadd.f32 %v856_v51, %v795_v5  ;;  %v864_v19 = vmul.f32 %v3526_v37, %v2691_v22  ;;  %v776_v2 = vmul.f32 %v3527_v25, %v2603_v0  ;;  %v749_v7 = vadd.f32 %v746_v27, %v685_v39  ;;  %v3531_v51 = vld [vmem:[#allocation45_spill] sm:$0xff]  ;;  %v3533_v5 = vld [vmem:[#allocation82_spill] sm:$0xff] }
 0x112   :  { %v851_v13 = vadd.f32 %v848_v23, %v787_v10  ;;  %v817_v38 = vadd.f32 %v3528_v55, %v763_v28  ;;  %v715_v16 = vadd.f32 %v3529_v11, %v651_v56  ;;  %v928_v12 = vmul.f32 %v3530_v29, %v2729_v57  ;;  %v3535_v23 = vld [vmem:[#allocation108_spill] sm:$0xff]  ;;  %v3537_v56 = vld [vmem:[#allocation79_spill] sm:$0xff] }
 0x113   :  { %v923_v49 = vadd.f32 %v920_v9, %v859_v54  ;;  %v643_v60 = vadd.f32 %v3532_v63, %v3531_v51  ;;  %v768_v43 = vmul.f32 %v3533_v5, %v2603_v0  ;;  %v803_v18 = vadd.f32 %v3534_v1, %v749_v7  ;;  %v3536_v9 = vld [vmem:[#allocation114_spill] sm:$0xff]  ;;  %v3538_v51 = vld [vmem:[#allocation104_spill] sm:$0xff]  ;;  %v3539_v0 = vld [vmem:[#allocation115_spill] sm:$0xff] }
 0x114   :  { %v915_v52 = vadd.f32 %v912_v17, %v851_v13  ;;  %v779_v6 = vadd.f32 %v776_v2, %v715_v16  ;;  %v894_v10 = vmul.f32 %v3535_v23, %v2691_v22  ;;  %v881_v28 = vadd.f32 %v878_v45, %v817_v38  ;;  %v3541_v38 = vld [vmem:[#allocation130_spill] sm:$0xff] }
 0x115   :  { %v987_v27 = vadd.f32 %v984_v30, %v923_v49  ;;  %v992_v39 = vmul.f32 %v3536_v9, %v2766_v36  ;;  %v707_v54 = vadd.f32 %v3537_v56, %v643_v60  ;;  %v867_v11 = vadd.f32 %v864_v19, %v803_v18  ;;  %v3540_v30 = vld [vmem:[#allocation117_spill] sm:$0xff]  ;;  %v3543_v49 = vld [vmem:[#allocation118_spill] sm:$0xff] }
 0x116   :  { %v979_v55 = vadd.f32 %v976_v42, %v915_v52  ;;  %v833_v63 = vadd.f32 %v3538_v51, %v779_v6  ;;  %v958_v17 = vmul.f32 %v3539_v0, %v2729_v57  ;;  %v945_v2 = vadd.f32 %v942_v59, %v881_v28  ;;  %v3542_v6 = vld [vmem:[#allocation116_spill] sm:$0xff]  ;;  %v3544_v59 = vld [vmem:[#allocation109_spill] sm:$0xff]  ;;  %v3545_v1 = vld [vmem:[#allocation42_spill] sm:$0xff] }
 0x117   :  { %1037 = vrot.lane.b32.xlu1 %v987_v27, %s1362_s8  ;;  %v771_v13 = vadd.f32 %v768_v43, %v707_v54  ;;  %v886_v45 = vmul.f32 %v3540_v30, %v2691_v22  ;;  %v607_v7 = vadd.f32 %v3541_v38, %v2743_v46  ;;  %v931_v42 = vadd.f32 %v928_v12, %v867_v11  ;;  %v3546_v27 = vld [vmem:[#allocation43_spill] sm:$0xff]  ;;  %v3549_v51 = vld [vmem:[#allocation56_spill] sm:$0xff] }
 0x118   :  { %1028 = vrot.lane.b32.xlu0 %v979_v55, %s1363_s20  ;;  %v897_v19 = vadd.f32 %v894_v10, %v833_v63  ;;  %v1022_v16 = vmul.f32 %v3542_v6, %v2766_v36  ;;  %v950_v60 = vmul.f32 %v3543_v49, %v2729_v57  ;;  %v1009_v52 = vadd.f32 %v1006_v4, %v945_v2  ;;  %v3547_v54 = vld [vmem:[#allocation119_spill] sm:$0xff]  ;;  %v3548_v4 = vld [vmem:[#allocation60_spill] sm:$0xff] }
 0x119   :  { %v825_v43 = vadd.f32 %v3544_v59, %v771_v13  ;;  %v671_v18 = vadd.f32 %v3545_v1, %v607_v7  ;;  %v542_v28 = vadd.f32 %v3546_v27, %v2635_v26  ;;  %v995_v46 = vadd.f32 %v992_v39, %v931_v42  ;;  %v3550_v2 = vld [vmem:[#allocation139_spill] sm:$0xff]  ;;  %v3554_v59 = vld [vmem:[#allocation74_spill] sm:$0xff]  ;;  %v3556_v1 = vld [vmem:[#allocation57_spill] sm:$0xff] }
 0x11a   :  { %v961_v56 = vadd.f32 %v958_v17, %v897_v19  ;;  %v1014_v12 = vmul.f32 %v3547_v54, %v2766_v36  ;;  %v850_v10 = vmul.f32 %v3515_v15, %v2698_v14  ;;  %v731_v13 = vmul.f32 %v3448_v31, %v3550_v2  ;;  %v3552_v38 = vld [vmem:[#allocation39_spill] sm:$0xff] }
 0x11b   :  { %1061 = vrot.lane.b32.xlu1 %v1009_v52, %s1364_s18  ;;  %v889_v55 = vadd.f32 %v886_v45, %v825_v43  ;;  %v735_v11 = vadd.f32 %v3548_v4, %v671_v18  ;;  %v606_v63 = vadd.f32 %v3549_v51, %v542_v28  ;;  %v2856_v26 = vadd.f32 %v2747_v53, %v2735_v35  ;;  %v3551_v45 = vld [vmem:[#allocation143_spill] sm:$0xff]  ;;  %v3553_v52 = vld [vmem:[#allocation113_spill] sm:$0xff] }
 0x11c   :  { %1048 = vrot.lane.b32.xlu0 %v995_v46, %s1365_s1  ;;  %v914_v39 = vmul.f32 %v3516_v61, %v2733_v32  ;;  %v978_v17 = vmul.f32 %v3518_v40, %v2772_v24  ;;  %v550_v7 = vadd.f32 %v3552_v38, %v3551_v45  ;;  %v1025_v42 = vadd.f32 %v1022_v16, %v961_v56  ;;  %v3555_v35 = vld [vmem:[#allocation61_spill] sm:$0xff]  ;;  %v3557_v28 = vld [vmem:[#allocation131_spill] sm:$0xff]  ;;  %v3561_v45 = vld [vmem:[#allocation66_spill] sm:$0xff] }
 0x11d   :  { %v953_v19 = vadd.f32 %v950_v60, %v889_v55  ;;  %v789_v31 = vadd.f32 %v3553_v52, %v735_v11  ;;  %v670_v43 = vadd.f32 %v3554_v59, %v606_v63  ;;  %v849_v53 = vmul.f32 %v3515_v15, %v3555_v35  ;;  %v3558_v55 = vld [vmem:[#allocation142_spill] sm:$0xff]  ;;  %v3559_v11 = vld [vmem:[#allocation136_spill] sm:$0xff]  ;;  %v3560_v51 = vld [vmem:[#allocation75_spill] sm:$0xff] }
 0x11e   :  { %v614_v18 = vadd.f32 %v3556_v1, %v550_v7  ;;  %v739_v27 = vmul.f32 %v3451_v33, %v3550_v2  ;;  %v615_v46 = vadd.f32 %v3557_v28, %v2752_v48  ;;  %v913_v4 = vmul.f32 %v3516_v61, %v3558_v55  ;;  %v3563_v61 = vld [vmem:[#allocation132_spill] sm:$0xff] }
 0x11f   :  { %1083 = vrot.lane.b32.xlu1 %v1025_v42, %s1366_s0  ;;  %v1017_v16 = vadd.f32 %v1014_v12, %v953_v19  ;;  %v853_v60 = vadd.f32 %v850_v10, %v789_v31  ;;  %v734_v56 = vadd.f32 %v731_v13, %v670_v43  ;;  %v977_v15 = vmul.f32 %v3518_v40, %v3559_v11  ;;  %v3562_v12 = vld [vmem:[#allocation121_spill] sm:$0xff]  ;;  %v3564_v19 = vld [vmem:[#allocation63_spill] sm:$0xff]  ;;  %v3567_v28 = vld [vmem:[#allocation40_spill] sm:$0xff] }
 0x120   :  { %v678_v63 = vadd.f32 %v3560_v51, %v614_v18  ;;  %v857_v33 = vmul.f32 %v3512_v62, %v3555_v35  ;;  %v679_v38 = vadd.f32 %v3561_v45, %v615_v46  ;;  %v921_v13 = vmul.f32 %v3513_v58, %v3558_v55  ;;  %v3566_v18 = vld [vmem:[#allocation144_spill] sm:$0xff] }
 0x121   :  { %1072 = vrot.lane.b32.xlu0 %v1017_v16, %s1367_s25  ;;  %v917_v48 = vadd.f32 %v914_v39, %v853_v60  ;;  %v788_v10 = vadd.f32 %v3562_v12, %v734_v56  ;;  %v623_v7 = vadd.f32 %v3563_v61, %v2754_v21  ;;  %v985_v42 = vmul.f32 %v3514_v8, %v3559_v11  ;;  %v3565_v39 = vld [vmem:[#allocation46_spill] sm:$0xff]  ;;  %v3569_v56 = vld [vmem:[#allocation123_spill] sm:$0xff]  ;;  %v3573_v61 = vld [vmem:[#allocation120_spill] sm:$0xff] }
 0x122   :  { %v742_v40 = vadd.f32 %v739_v27, %v678_v63  ;;  %v743_v52 = vadd.f32 %v3564_v19, %v679_v38  ;;  %v858_v31 = vmul.f32 %v3512_v62, %v2698_v14  ;;  %v558_v46 = vadd.f32 %v3567_v28, %v3566_v18  ;;  %v3568_v16 = vld [vmem:[#allocation122_spill] sm:$0xff]  ;;  %v3574_v19 = vld [vmem:[#allocation77_spill] sm:$0xff] }
 0x123   :  { %v981_v59 = vadd.f32 %v978_v17, %v917_v48  ;;  %v852_v43 = vadd.f32 %v849_v53, %v788_v10  ;;  %v687_v1 = vadd.f32 %v3565_v39, %v623_v7  ;;  %v922_v27 = vmul.f32 %v3513_v58, %v2733_v32  ;;  %v3570_v17 = vld [vmem:[#allocation64_spill] sm:$0xff]  ;;  %v3571_v63 = vld [vmem:[#allocation58_spill] sm:$0xff]  ;;  %v3572_v10 = vld [vmem:[#allocation145_spill] sm:$0xff] }
 0x124   :  { %v796_v60 = vadd.f32 %v3568_v16, %v742_v40  ;;  %v797_v21 = vadd.f32 %v3569_v56, %v743_v52  ;;  %v986_v51 = vmul.f32 %v3514_v8, %v2772_v24  ;;  %v622_v45 = vadd.f32 %v3571_v63, %v558_v46  ;;  %v3578_v56 = vld [vmem:[#allocation12_spill] sm:$0xff]  ;;  %v3581_v63 = vld [vmem:[#allocation35_spill] sm:$0xff] }
 0x125   :  { %1032 = vrot.lane.b32.xlu0 %v981_v59, %s1363_s20  ;;  %v916_v62 = vadd.f32 %v913_v4, %v852_v43  ;;  %v751_v53 = vadd.f32 %v3570_v17, %v687_v1  ;;  %v747_v38 = vmul.f32 %v3453_v20, %v3550_v2  ;;  %v866_v12 = vmul.f32 %v3526_v37, %v2698_v14  ;;  %v3575_v43 = vld [vmem:[#allocation124_spill] sm:$0xff] }
 0x126   :  { %v860_v48 = vadd.f32 %v857_v33, %v796_v60  ;;  %v930_v58 = vmul.f32 %v3530_v29, %v2733_v32  ;;  %v572_v8 = vadd.f32 %v3573_v61, %v3572_v10  ;;  %v861_v40 = vadd.f32 %v858_v31, %v797_v21  ;;  %v3576_v33 = vld [vmem:[#allocation68_spill] sm:$0xff]  ;;  %v3579_v21 = vld [vmem:[#allocation97_spill] sm:$0xff] }
 0x127   :  { %v980_v7 = vadd.f32 %v977_v15, %v916_v62  ;;  %v994_v4 = vmul.f32 %v3536_v9, %v2772_v24  ;;  %v686_v52 = vadd.f32 %v3574_v19, %v622_v45  ;;  %v805_v20 = vadd.f32 %v3575_v43, %v751_v53  ;;  %v3580_v53 = vld [vmem:[#allocation125_spill] sm:$0xff] }
 0x128   :  { %v924_v59 = vadd.f32 %v921_v13, %v860_v48  ;;  %v636_v39 = vadd.f32 %v3576_v33, %v572_v8  ;;  %v761_v1 = vmul.f32 %v3455_v50, %v3550_v2  ;;  %v925_v18 = vadd.f32 %v922_v27, %v861_v40  ;;  %v3577_v13 = vld [vmem:[#allocation78_spill] sm:$0xff]  ;;  %v3582_v48 = vld [vmem:[#allocation53_spill] sm:$0xff] }
 0x129   :  { %1030 = vrot.lane.b32.xlu1 %v980_v7, %s1363_s20  ;;  %v750_v28 = vadd.f32 %v747_v38, %v686_v52  ;;  %v865_v15 = vmul.f32 %v3526_v37, %v3555_v35  ;;  %v929_v31 = vmul.f32 %v3530_v29, %v3558_v55  ;;  %v869_v16 = vadd.f32 %v866_v12, %v805_v20  ;;  %v3583_v10 = vld [vmem:[#allocation37_spill] sm:$0xff] }
 0x12a   :  { %v988_v46 = vadd.f32 %v985_v42, %v924_v59  ;;  %v700_v60 = vadd.f32 %v3577_v13, %v636_v39  ;;  %v815_v62 = vmul.f32 %v3579_v21, %v3578_v56  ;;  %v989_v17 = vadd.f32 %v986_v51, %v925_v18  ;;  %v3584_v19 = vld [vmem:[#allocation65_spill] sm:$0xff]  ;;  %v3585_v59 = vld [vmem:[#allocation54_spill] sm:$0xff] }
 0x12b   :  { %v804_v50 = vadd.f32 %v3580_v53, %v750_v28  ;;  %v993_v27 = vmul.f32 %v3536_v9, %v3559_v11  ;;  %v637_v45 = vadd.f32 %v3581_v63, %v2760_v44  ;;  %v933_v37 = vadd.f32 %v930_v58, %v869_v16  ;;  %v3586_v20 = vld [vmem:[#allocation105_spill] sm:$0xff] }
 0x12c   :  { %1039 = vrot.lane.b32.xlu0 %v988_v46, %s1362_s8  ;;  %v764_v29 = vadd.f32 %v761_v1, %v700_v60  ;;  %v879_v42 = vmul.f32 %v3519_v41, %v3555_v35  ;;  %v943_v38 = vmul.f32 %v3520_v47, %v3558_v55  ;;  %v816_v9 = vmul.f32 0.0, %v3579_v21  ;;  %v3587_v1 = vld [vmem:[#allocation83_spill] sm:$0xff]  ;;  %v3588_v18 = vld [vmem:[#allocation41_spill] sm:$0xff] }
 0x12d   :  { %1041 = vrot.lane.b32.xlu1 %v989_v17, %s1362_s8  ;;  %v868_v51 = vadd.f32 %v865_v15, %v804_v50  ;;  %v701_v12 = vadd.f32 %v3582_v48, %v637_v45  ;;  %v645_v44 = vadd.f32 %v3583_v10, %v2762_v34  ;;  %v997_v61 = vadd.f32 %v994_v4, %v933_v37  ;;  %v3590_v21 = vld [vmem:[#allocation69_spill] sm:$0xff]  ;;  %v3591_v50 = vld [vmem:[#allocation146_spill] sm:$0xff]  ;;  %v3593_v37 = vld [vmem:[#allocation80_spill] sm:$0xff] }
 0x12e   :  { %v818_v8 = vadd.f32 %v815_v62, %v764_v29  ;;  %v1007_v58 = vmul.f32 %v3525_v3, %v3559_v11  ;;  %v880_v7 = vmul.f32 %v3519_v41, %v2698_v14  ;;  %v824_v33 = vmul.f32 0.0, %v3586_v20  ;;  %v3594_v48 = vld [vmem:[#allocation71_spill] sm:$0xff] }
 0x12f   :  { %v932_v40 = vadd.f32 %v929_v31, %v868_v51  ;;  %v765_v52 = vadd.f32 %v3584_v19, %v701_v12  ;;  %v709_v43 = vadd.f32 %v3585_v59, %v645_v44  ;;  %v944_v34 = vmul.f32 %v3520_v47, %v2733_v32  ;;  %v3589_v31 = vld [vmem:[#allocation72_spill] sm:$0xff] }
 0x130   :  { %1052 = vrot.lane.b32.xlu0 %v997_v61, %s1365_s1  ;;  %v882_v39 = vadd.f32 %v879_v42, %v818_v8  ;;  %v1008_v4 = vmul.f32 %v3525_v3, %v2772_v24  ;;  %v580_v28 = vadd.f32 %v3588_v18, %v3587_v1  ;;  %v888_v16 = vmul.f32 %v3540_v30, %v2698_v14  ;;  %v3599_v1 = vld [vmem:[#allocation73_spill] sm:$0xff] }
 0x131   :  { %v996_v41 = vadd.f32 %v993_v27, %v932_v40  ;;  %v819_v15 = vadd.f32 %v816_v9, %v765_v52  ;;  %v773_v46 = vadd.f32 %v3589_v31, %v709_v43  ;;  %v952_v60 = vmul.f32 %v3543_v49, %v2733_v32  ;;  %v3592_v27 = vld [vmem:[#allocation133_spill] sm:$0xff]  ;;  %v3596_v40 = vld [vmem:[#allocation138_spill] sm:$0xff]  ;;  %v3598_v43 = vld [vmem:[#allocation55_spill] sm:$0xff] }
 0x132   :  { %v946_v13 = vadd.f32 %v943_v38, %v882_v39  ;;  %v644_v62 = vadd.f32 %v3590_v21, %v580_v28  ;;  %v769_v47 = vmul.f32 %v3533_v5, %v3550_v2  ;;  %v1016_v53 = vmul.f32 %v3547_v54, %v2772_v24 }
 0x133   :  { %1050 = vrot.lane.b32.xlu1 %v996_v41, %s1365_s1  ;;  %v883_v3 = vadd.f32 %v880_v7, %v819_v15  ;;  %v827_v17 = vadd.f32 %v824_v33, %v773_v46  ;;  %v588_v63 = vadd.f32 %v3592_v27, %v3591_v50  ;;  %v823_v5 = vmul.f32 %v3586_v20, %v3578_v56  ;;  %v3600_v41 = vld [vmem:[#allocation62_spill] sm:$0xff]  ;;  %v3601_v15 = vld [vmem:[#allocation88_spill] sm:$0xff] }
 0x134   :  { %v1010_v45 = vadd.f32 %v1007_v58, %v946_v13  ;;  %v708_v29 = vadd.f32 %v3593_v37, %v644_v62  ;;  %v887_v42 = vmul.f32 %v3540_v30, %v3555_v35  ;;  %v777_v9 = vmul.f32 %v3527_v25, %v3550_v2  ;;  %v3595_v30 = vld [vmem:[#allocation38_spill] sm:$0xff]  ;;  %v3597_v25 = vld [vmem:[#allocation101_spill] sm:$0xff] }
 0x135   :  { %v947_v38 = vadd.f32 %v944_v34, %v883_v3  ;;  %v891_v51 = vadd.f32 %v888_v16, %v827_v17  ;;  %v652_v12 = vadd.f32 %v3594_v48, %v588_v63  ;;  %v951_v44 = vmul.f32 %v3543_v49, %v3558_v55  ;;  %v3603_v17 = vld [vmem:[#allocation13_spill] sm:$0xff]  ;;  %v3604_v37 = vld [vmem:[#allocation70_spill] sm:$0xff]  ;;  %v3607_v48 = vld [vmem:[#allocation127_spill] sm:$0xff] }
 0x136   :  { %1063 = vrot.lane.b32.xlu0 %v1010_v45, %s1364_s18  ;;  %v772_v10 = vadd.f32 %v769_v47, %v708_v29  ;;  %v1015_v61 = vmul.f32 %v3547_v54, %v3559_v11  ;;  %v653_v8 = vadd.f32 %v3595_v30, %v2856_v26  ;;  %v831_v52 = vmul.f32 %v3597_v25, %v3578_v56  ;;  %v3602_v47 = vld [vmem:[#allocation140_spill] sm:$0xff] }
 0x137   :  { %v1011_v58 = vadd.f32 %v1008_v4, %v947_v38  ;;  %v955_v7 = vadd.f32 %v952_v60, %v891_v51  ;;  %v716_v19 = vadd.f32 %v3596_v40, %v652_v12  ;;  %v895_v49 = vmul.f32 %v3535_v23, %v3555_v35  ;;  %v3606_v51 = vld [vmem:[#allocation141_spill] sm:$0xff] }
 0x138   :  { %v826_v59 = vadd.f32 %v823_v5, %v772_v10  ;;  %v717_v54 = vadd.f32 %v3598_v43, %v653_v8  ;;  %v832_v20 = vmul.f32 0.0, %v3597_v25  ;;  %v959_v39 = vmul.f32 %v3539_v0, %v3558_v55 }
 0x139   :  { %1065 = vrot.lane.b32.xlu1 %v1011_v58, %s1364_s18  ;;  %v1019_v26 = vadd.f32 %v1016_v53, %v955_v7  ;;  %v780_v33 = vadd.f32 %v777_v9, %v716_v19  ;;  %v1023_v34 = vmul.f32 %v3542_v6, %v3559_v11  ;;  %v896_v28 = vmul.f32 %v3535_v23, %v2698_v14 }
 0x13a   :  { %v890_v4 = vadd.f32 %v887_v42, %v826_v59  ;;  %v781_v18 = vadd.f32 %v3599_v1, %v717_v54  ;;  %v692_v31 = vadd.f32 %v3601_v15, %v3600_v41  ;;  %v960_v16 = vmul.f32 %v3539_v0, %v2733_v32 }
 0x13b   :  { %1076 = vrot.lane.b32.xlu0 %v1019_v26, %s1367_s25  ;;  %v834_v46 = vadd.f32 %v831_v52, %v780_v33  ;;  %v807_v13 = vstv %s2971_s26  ;;  %v871_v60 = vstv %s2973_s2  ;;  %v1024_v23 = vmul.f32 %v3542_v6, %v2772_v24 }
 0x13c   :  { %v954_v21 = vadd.f32 %v951_v44, %v890_v4  ;;  %v835_v62 = vadd.f32 %v832_v20, %v781_v18  ;;  %v756_v3 = vadd.f32 %v3602_v47, %v692_v31  ;;  %v808_v53 = vmul.f32 %v807_v13, %v3603_v17 }
 0x13d   :  { %v898_v14 = vadd.f32 %v895_v49, %v834_v46  ;;  %v872_v50 = vmul.f32 %v871_v60, %v2691_v22  ;;  %v935_v27 = vstv %s2983_s24  ;;  %v3605_v29 = vstv %s1773_s28 }
 0x13e   :  { %v1018_v63 = vadd.f32 %v1015_v61, %v954_v21  ;;  %v899_v45 = vadd.f32 %v896_v28, %v835_v62  ;;  %v810_v32 = vadd.f32 %v808_v53, %v756_v3  ;;  %v936_v0 = vmul.f32 %v935_v27, %v2729_v57  ;;  %v3609_v61 = vld [vmem:[#allocation67_spill] sm:$0xff]  ;;  %v3610_v28 = vld [vmem:[#allocation29_spill] sm:$0xff] }
 0x13f   :  { %v691_v5 = vmul.f32 %v3605_v29, %v3604_v37  ;;  %v962_v42 = vadd.f32 %v959_v39, %v898_v14  ;;  %v999_v38 = vstv %s2995_s27  ;;  %v565_v12 = vadd.f32 %v3607_v48, %v3606_v51 }
 0x140   :  { %1074 = vrot.lane.b32.xlu1 %v1018_v63, %s1367_s25  ;;  %v963_v9 = vadd.f32 %v960_v16, %v899_v45  ;;  %v874_v24 = vadd.f32 %v872_v50, %v810_v32  ;;  %v1000_v22 = vmul.f32 %v999_v38, %v2766_v36  ;;  %v3608_v6 = vstv %s1775_s22 }
 0x141   :  { %v755_v10 = vmul.f32 %v3608_v6, %v3550_v2  ;;  %v1026_v44 = vadd.f32 %v1023_v34, %v962_v42  ;;  %v629_v57 = vadd.f32 %v3609_v61, %v565_v12  ;;  %v809_v7 = vmul.f32 %v807_v13, %v3578_v56 }
 0x142   :  { %v1027_v30 = vadd.f32 %v1024_v23, %v963_v9  ;;  %v938_v8 = vadd.f32 %v936_v0, %v874_v24  ;;  %v873_v36 = vmul.f32 %v871_v60, %v3555_v35  ;;  %v937_v2 = vmul.f32 %v935_v27, %v3558_v55 }
 0x143   :  { %1085 = vrot.lane.b32.xlu0 %v1026_v44, %s1366_s0  ;;  %v693_v58 = vadd.f32 %v691_v5, %v629_v57  ;;  %v1001_v59 = vmul.f32 %v999_v38, %v3559_v11  ;;  %vm1043_vm7 = vcmp.lt.s32.totalorder %v3610_v28, 32  ;;  %vm1034_vm8 = vcmp.lt.s32.totalorder %v3610_v28, 48 }
 0x144   :  { %1087 = vrot.lane.b32.xlu1 %v1027_v30, %s1366_s0  ;;  %v1002_v40 = vadd.f32 %v1000_v22, %v938_v8  ;;  %vm1054_vm14 = vcmp.lt.s32.totalorder %v3610_v28, 16  ;;  %vm1067_vm0 = vcmp.lt.s32.totalorder %v3610_v28, 112  ;;  %vm1078_vm3 = vcmp.lt.s32.totalorder %v3610_v28, 96 }
 0x145   :  { %v757_v19 = vadd.f32 %v755_v10, %v693_v58  ;;  %vm1089_vm2 = vcmp.lt.s32.totalorder %v3610_v28, 80  ;;  %v1095_v42 = vstv %s3611_s13  ;;  %v1368_v8 = vmov 1966171168  }
 0x146   :  { %v1114_v58 = vunpack.c.l.s4 %v1368_v8 }
 0x147   :  { %v811_v25 = vadd.f32 %v809_v7, %v757_v19 }
 0x148   :  { %v1115_v7 = vunpack.c.0.s8 %v1114_v58 }
 0x149   :  { %v875_v52 = vadd.f32 %v873_v36, %v811_v25 }
 0x14b   :  { %v939_v49 = vadd.f32 %v937_v2, %v875_v52 }
 0x14d   :  { %v1003_v43 = vadd.f32 %v1001_v59, %v939_v49 }
 0x189   :  { %v1038_v54 = vpop.permute.xlu1 %1037 }
 0x18a   :  { %v1029_v20 = vpop.permute.xlu0 %1028 }
 0x18d   :  { %v1062_v33 = vpop.permute.xlu1 %1061 }
 0x18e   :  { %v1049_v26 = vpop.permute.xlu0 %1048 }
 0x191   :  { %v1084_v56 = vpop.permute.xlu1 %1083 }
 0x193   :  { %v1073_v39 = vpop.permute.xlu0 %1072 }
 0x197   :  { %v1033_v34 = vpop.permute.xlu0 %1032 }
 0x198   :  { %v1036_v15 = vsel %vm1034_vm8, %v1033_v34, %v1029_v20 }
 0x19b   :  { %v1031_v4 = vpop.permute.xlu1 %1030 }
 0x19c   :  { %v1035_v46 = vsel %vm1034_vm8, %v1029_v20, %v1031_v4 }
 0x19e   :  { %v1040_v1 = vpop.permute.xlu0 %1039 }
 0x19f   :  { %v1042_v18 = vpop.permute.xlu1 %1041  ;;  %v1044_v41 = vsel %vm1043_vm7, %v1038_v54, %v1040_v1 }
 0x1a0   :  { %v1045_v55 = vsel %vm1043_vm7, %v1042_v18, %v1038_v54  ;;  %v1047_v21 = vadd.f32 %v1044_v41, %v1035_v46 }
 0x1a1   :  { %v1046_v16 = vadd.f32 %v1045_v55, %v1036_v15 }
 0x1a2   :  { %v1053_v35 = vpop.permute.xlu0 %1052 }
 0x1a3   :  { %v1056_v31 = vsel %vm1054_vm14, %v1053_v35, %v1049_v26 }
 0x1a4   :  { %v1057_v62 = vadd.f32 %v1056_v31, %v1046_v16 }
 0x1a5   :  { %v1051_v11 = vpop.permute.xlu1 %1050 }
 0x1a6   :  { %v1055_v13 = vsel %vm1054_vm14, %v1049_v26, %v1051_v11  ;;  %v1059_v17 = vadd.f32 %v1057_v62, %v1002_v40  ;;  %v3612_v40 = vlaneseq }
 0x1a7   :  { %v1058_v47 = vadd.f32 %v1055_v13, %v1047_v21 }
 0x1a8   :  { %v1064_v60 = vpop.permute.xlu0 %1063  ;;  %v1117_v19 = vshrl.u32 %v3612_v40, 7  ;;  %vm1139_vm4 = vcmp.lt.s32.totalorder %v3612_v40, 256 }
 0x1a9   :  { %v1069_v14 = vsel %vm1067_vm0, %v1062_v33, %v1064_v60  ;;  %v1060_v23 = vadd.f32 %v1058_v47, %v1003_v43 }
 0x1aa   :  { %v1070_v63 = vadd.f32 %v1069_v14, %v1059_v17  ;;  %v1118_v36 = vsub.s32 %v1115_v7, %v1117_v19 }
 0x1ab   :  { %v1066_v3 = vpop.permute.xlu1 %1065 }
 0x1ac   :  { %v1068_v50 = vsel %vm1067_vm0, %v1064_v60, %v1066_v3 }
 0x1ad   :  { %v1077_v53 = vpop.permute.xlu0 %1076  ;;  %v1071_v0 = vadd.f32 %v1068_v50, %v1060_v23 }
 0x1b2   :  { %v1075_v27 = vpop.permute.xlu1 %1074 }
 0x1b3   :  { %v1079_v45 = vsel %vm1078_vm3, %v1075_v27, %v1077_v53  ;;  %v1080_v32 = vsel %vm1078_vm3, %v1073_v39, %v1075_v27 }
 0x1b4   :  { %v1081_v37 = vadd.f32 %v1080_v32, %v1070_v63  ;;  %v1082_v5 = vadd.f32 %v1079_v45, %v1071_v0 }
 0x1b5   :  { %v1086_v29 = vpop.permute.xlu0 %1085 }
 0x1b6   :  { %v1091_v38 = vsel %vm1089_vm2, %v1084_v56, %v1086_v29  ;;  %v1088_v51 = vpop.permute.xlu1 %1087 }
 0x1b7   :  { %v1092_v48 = vadd.f32 %v1091_v38, %v1081_v37  ;;  %v1090_v12 = vsel %vm1089_vm2, %v1086_v29, %v1088_v51 }
 0x1b8   :  { %v1093_v9 = vadd.f32 %v1090_v12, %v1082_v5 }
 0x1b9   :  { %v1096_v24 = vadd.f32 %v1095_v42, %v1092_v48 }
 0x1ba   :  { %v1097_v22 = vadd.f32 %v1095_v42, %v1093_v9 }
 0x1bb   :  { %v1258_v6 = vmul.f32 -1.442695, %v1096_v24 }
 0x1bc   :  { %v1259_v10 = vmul.f32 -1.442695, %v1097_v22 }
 0x1bd   :  { %1281 = vpow2.f32 %v1258_v6 }
 0x1be   :  { %1283 = vpow2.f32 %v1259_v10 }
 0x1c7   :  { %v1282_v44 = vpop.eup %1281 }
 0x1c8   :  { %v1284_v61 = vpop.eup %1283  ;;  %v1104_v57 = vadd.f32 1.0, %v1282_v44 }
 0x1c9   :  { %v1105_v30 = vadd.f32 1.0, %v1284_v61 }
 0x1ca   :  { %1285 = vrcp.f32 %v1104_v57 }
 0x1cb   :  { %1287 = vrcp.f32 %v1105_v30 }
 0x1d4   :  { %v1286_v25 = vpop.eup %1285 }
 0x1d5   :  { %v1288_v52 = vpop.eup %1287 }
 0x1d6   :  { %v1112_v2 = vcombine.low %v1286_v25, %v1288_v52 }
 0x1d8   :  { %v1119_v59 = vrot.slane %v1112_v2, %v1118_v36 }
 0x1da   :  { %v1120_v49 = vcombine.high %v1119_v59, %v1119_v59  ;;  %v1127_v43 = vrot.slane %v1119_v59, %v1118_v36 }
 0x1dc   :  { %v1134_v54 = vrot.slane %v1120_v49, %v1118_v36  ;;  %1141 = vst.msk [vmem:[#allocation8] sm:$0x3] %vm1139_vm4, %v1127_v43 }
 0x1de   :  { %1142 = vst.msk [vmem:[#allocation8 + $0x2] sm:$0x3] %vm1139_vm4, %v1134_v54 }
 0x1df   :  { %1334 = shalt.err (!%p1331_p3)
}
 0x1e0   :  { %s3613_s6 = sld [smem:[#allocation148_spill]] }
 0x1e6   :  { %s1335_s23 = scalar_lea.hbm %s3613_s6, 64 }
 0x1e7   :  { %p1336_p4 = scmp.ne.s32.totalorder %s3613_s6, %s1335_s23  ;;  %p1339_p5 = scmp.lt.u32.totalorder %s1335_s23, %s3613_s6 }
 0x1e9   :  { %p1341_p6 = pnand %p1339_p5, %p1336_p4 }
 0x1eb   :  { %1344 = shalt.err (!%p1341_p6)
}
 0x1ec   :  { %s3614_s29 = smov 2  }
 0x1ed   :  { %1154 = dma.vmem_to_hbm [thread:$0]  %s1149_s14, 64, %s3613_s6, [#allocation5], %s1362_s8, %s1362_s8, %s3614_s29  }
 0x1ee   :  { %1349 = dma.done.wait [#allocation5], 64  }
 0x1ef   :  { %1350 = vsyncadd [#allocation5], 4294967232 }
 0x1f0   :  { %1158 = vsyncpa [#allocation4], 1 }
 0x1f1   :  { %1159 = vsyncpa [#allocation5], 1 }
 0x1f2   :  { %1160 = vsyncpa [#allocation6], 1 }

</bundles_post_ra>
